<compile_context>
chip_gen: v5e
topology: v5e:2x2
jax: 0.10.0
libtpu: 0.0.40
codegen_flags: <defaults>
</compile_context>

<pallas_src>
import jax
import jax.numpy as jnp
from jax.experimental import pallas as pl
from jax.experimental.pallas import tpu as pltpu


def _round_up(x, m):
    return (x + m - 1) // m * m


def _gru_block_kernel(gi_ref, whh_ref, bhn_ref, lens_ref,
                      out_ref, hfin_ref, h_scratch):
    """Tt GRU time steps for one batch tile.  grid = (batch_tiles, time_blocks).

      gi_ref   : (Tt, TB, 3*Hp) bf16  x_t @ W_ih^T + b_ih (+ b_hr, b_hz), gate slots
      whh_ref  : (Hp, 3*Hp)     bf16  W_hh^T, gate slots, zero padded
      bhn_ref  : (1, Hp)        f32   b_hn (must stay inside r * (W_hn h + b_hn))
      lens_ref : (TB, Hp)       i32   per-row sequence length (lane broadcast)
      out_ref  : (Tt, TB, Hp)   bf16  output[t] (zeros past each length)
      hfin_ref : (1, TB, Hp)    f32   final hidden (written at last block only)
      h_scratch: (TB, Hp)       f32   carried hidden state
    """
    tt = pl.program_id(1)
    n_steps = gi_ref.shape[0]                 # Tt (static)
    hp = h_scratch.shape[-1]                  # Hp (static)

    @pl.when(tt == 0)
    def _init():
        h_scratch[...] = jnp.zeros_like(h_scratch)

    whh = whh_ref[...]                        # (Hp, 3Hp) bf16, loop invariant
    bhn = bhn_ref[...]                        # (1, Hp)  f32
    lens = lens_ref[...]                      # (TB, Hp) i32
    t0 = tt * n_steps

    def step(i, h_prev):
        # Recurrent projection only: bf16 MXU inputs, f32 accumulation.
        gh = jnp.dot(h_prev.astype(whh.dtype), whh,
                     preferred_element_type=jnp.float32)          # (TB, 3Hp) f32
        gi = gi_ref[i].astype(jnp.float32)                        # (TB, 3Hp) f32

        i_r, i_z, i_n = gi[:, :hp], gi[:, hp:2 * hp], gi[:, 2 * hp:]
        h_r, h_z, h_n = gh[:, :hp], gh[:, hp:2 * hp], gh[:, 2 * hp:]

        r = jax.nn.sigmoid(i_r + h_r)                             # b_ir+b_hr in gi
        z = jax.nn.sigmoid(i_z + h_z)                             # b_iz+b_hz in gi
        n = jnp.tanh(i_n + r * (h_n + bhn))                       # b_hn stays here
        h_new = (1.0 - z) * n + z * h_prev

        # pack_padded / pad_packed semantics: freeze h and zero the output for
        # t >= length[b] (one vectorized compare + lerp, no selects).
        m = ((t0 + i) < lens).astype(jnp.float32)                 # (TB, Hp)
        h_next = h_prev + m * (h_new - h_prev)
        out_ref[i] = (m * h_new).astype(out_ref.dtype)
        return h_next

    h = jax.lax.fori_loop(0, n_steps, step, h_scratch[...], unroll=True)
    h_scratch[...] = h

    @pl.when(tt == pl.num_programs(1) - 1)
    def _finalize():
        hfin_ref[0] = h.astype(hfin_ref.dtype)


def encoder_rnn_forward(tokens_bt, lengths, emb_table, w_ih, w_hh, b_ih, b_hh,
                        *, batch_tile=None, time_block=None):
    """EncoderRNN.forward equivalent.

    tokens_bt: (B, T) int32 padded token ids; lengths: (B,) int32 (>= 1,
    sorted descending as pack_padded_sequence requires).
    w_ih / w_hh: PyTorch GRU layout (3H, H), gate order (r, z, n); b_*: (3H,).
    Returns (output (B, T, H) batch_first with zeros past each length,
             hidden (1, B, H))."""
    B, T = tokens_bt.shape
    H = emb_table.shape[1]
    Hp = _round_up(H, 128)                       # lane-dense hidden

    # Batch tile: whole (8-aligned) batch if small, else 256 MXU rows.
    # Pass batch_tile=128 on v5e (128x128 MXU).
    if batch_tile is None:
        batch_tile = min(_round_up(B, 8), 256)
    TB = batch_tile
    Bp = _round_up(B, TB)

    # Time block: Tt sequential steps per grid iteration.
    if time_block is None:
        time_block = min(T, 16)
    Tt = time_block
    Tp = _round_up(T, Tt)

    # ---- XLA glue: build gi directly in padded / gate-slot / time-major layout.
    emb_p = jnp.zeros((emb_table.shape[0], Hp), emb_table.dtype).at[:, :H].set(emb_table)
    tok_p = jnp.zeros((Tp, Bp), jnp.int32).at[:T, :B].set(
        jnp.transpose(tokens_bt).astype(jnp.int32))
    embedded = emb_p[tok_p]                                        # (Tp, Bp, Hp)

    # Gate-slot W_ih^T: (Hp, 3*Hp), slot g = W_i{r,z,n}^T, zero padded, bf16.
    wih_g = jnp.transpose(w_ih.reshape(3, H, H), (2, 0, 1))        # (H, 3, H)
    wih_slot = jnp.zeros((Hp, 3, Hp), jnp.float32).at[:H, :, :H].set(wih_g)
    wih_slot = wih_slot.reshape(Hp, 3 * Hp).astype(jnp.bfloat16)

    # Fold b_ih plus the r/z halves of b_hh into gi; b_hn must stay separate.
    b_ih_g = b_ih.reshape(3, H)
    b_hh_g = b_hh.reshape(3, H)
    bias_fold = b_ih_g + b_hh_g.at[2].set(0.0)                     # (3, H)
    bias_slot = jnp.zeros((3, Hp), jnp.float32).at[:, :H].set(bias_fold)
    bias_slot = bias_slot.reshape(1, 3 * Hp)

    gi = jnp.dot(embedded.reshape(Tp * Bp, Hp).astype(jnp.bfloat16), wih_slot,
                 preferred_element_type=jnp.float32) + bias_slot
    gi_p = gi.astype(jnp.bfloat16).reshape(Tp, Bp, 3 * Hp)         # bf16 stream

    # Gate-slot W_hh^T, zero padded, bf16 for the MXU.
    whh_g = jnp.transpose(w_hh.reshape(3, H, H), (2, 0, 1))        # (H, 3, H)
    whh_p = jnp.zeros((Hp, 3, Hp), jnp.float32).at[:H, :, :H].set(whh_g)
    whh_p = whh_p.reshape(Hp, 3 * Hp).astype(jnp.bfloat16)

    bhn_p = jnp.zeros((1, Hp), jnp.float32).at[0, :H].set(b_hh_g[2])

    # Loop-invariant lengths block (padded batch rows get length 0 -> masked).
    lens_p = jnp.zeros((Bp, Hp), jnp.int32).at[:B, :].set(
        jnp.broadcast_to(lengths.astype(jnp.int32)[:, None], (B, Hp)))

    out_p, hid_p = pl.pallas_call(
        _gru_block_kernel,
        out_shape=(
            jax.ShapeDtypeStruct((Tp, Bp, Hp), jnp.bfloat16),      # per-step output
            jax.ShapeDtypeStruct((1, Bp, Hp), jnp.float32),        # final hidden
        ),
        grid_spec=pltpu.PrefetchScalarGridSpec(
            num_scalar_prefetch=0,
            grid=(Bp // TB, Tp // Tt),                             # (batch, time blocks)
            in_specs=[
                pl.BlockSpec((Tt, TB, 3 * Hp), lambda b, t: (t, b, 0)),   # gi block
                pl.BlockSpec((Hp, 3 * Hp), lambda b, t: (0, 0)),          # W_hh^T
                pl.BlockSpec((1, Hp), lambda b, t: (0, 0)),               # b_hn
                pl.BlockSpec((TB, Hp), lambda b, t: (b, 0)),              # lengths
            ],
            out_specs=[
                pl.BlockSpec((Tt, TB, Hp), lambda b, t: (t, b, 0)),       # output
                pl.BlockSpec((1, TB, Hp), lambda b, t: (0, b, 0)),        # hidden
            ],
            scratch_shapes=[pltpu.VMEM((TB, Hp), jnp.float32)],           # carried h
        ),
        compiler_params=pltpu.CompilerParams(
            dimension_semantics=("parallel", "arbitrary"),         # time sequential
            vmem_limit_bytes=48 * 1024 * 1024,                     # v7x-safe headroom
        ),
    )(gi_p, whh_p, bhn_p, lens_p)

    # batch_first output, f32 like the PyTorch module (transpose done in bf16).
    output = jnp.transpose(out_p[:T, :B, :H], (1, 0, 2)).astype(jnp.float32)
    hidden = hid_p[:, :B, :H]                                      # (1, B, H)
    return output, hidden


def reference_forward(tokens_bt, lengths, emb_table, w_ih, w_hh, b_ih, b_hh):
    """Pure-JAX lax.scan reference with the same bf16-stream / f32-gate
    numerics as the kernel (for correctness checking)."""
    B, T = tokens_bt.shape
    H = emb_table.shape[1]
    x = emb_table[tokens_bt]                                       # (B, T, H)
    wih_t = jnp.transpose(w_ih).astype(jnp.bfloat16)               # (H, 3H)
    whh_t = jnp.transpose(w_hh).astype(jnp.bfloat16)
    b_ih_g = b_ih.reshape(3, H)
    b_hh_g = b_hh.reshape(3, H)
    bias_fold = (b_ih_g + b_hh_g.at[2].set(0.0)).reshape(3 * H)
    b_hn = b_hh_g[2]
    gi_all = (jnp.dot(x.astype(jnp.bfloat16), wih_t,
                      preferred_element_type=jnp.float32) + bias_fold
              ).astype(jnp.bfloat16).astype(jnp.float32)           # (B, T, 3H)

    def step(h, inp):
        gi, t = inp
        gh = jnp.dot(h.astype(jnp.bfloat16), whh_t,
                     preferred_element_type=jnp.float32)
        i_r, i_z, i_n = jnp.split(gi, 3, axis=-1)
        h_r, h_z, h_n = jnp.split(gh, 3, axis=-1)
        r = jax.nn.sigmoid(i_r + h_r)
        z = jax.nn.sigmoid(i_z + h_z)
        n = jnp.tanh(i_n + r * (h_n + b_hn))
        h_new = (1.0 - z) * n + z * h
        m = (t < lengths).astype(jnp.float32)[:, None]
        h_next = h + m * (h_new - h)
        out = (m * h_new).astype(jnp.bfloat16).astype(jnp.float32)
        return h_next, out

    h0 = jnp.zeros((B, H), jnp.float32)
    h_fin, outs = jax.lax.scan(
        step, h0,
        (jnp.transpose(gi_all, (1, 0, 2)), jnp.arange(T, dtype=jnp.int32)))
    return jnp.transpose(outs, (1, 0, 2)), h_fin[None]


if __name__ == "__main__":
    # Small deterministic setup: vocab=16, batch=4, seq=8, hidden=32.
    vocab_size, B, T, H = 16, 4, 8, 32
    key = jax.random.PRNGKey(0)
    k_emb, k_tok, kw1, kw2, kb1, kb2 = jax.random.split(key, 6)

    # nn.Embedding ~ N(0,1); nn.GRU params ~ U(-1/sqrt(H), 1/sqrt(H)).
    emb_table = jax.random.normal(k_emb, (vocab_size, H), dtype=jnp.float32)
    bound = 1.0 / jnp.sqrt(jnp.float32(H))
    w_ih = jax.random.uniform(kw1, (3 * H, H), jnp.float32, -bound, bound)
    w_hh = jax.random.uniform(kw2, (3 * H, H), jnp.float32, -bound, bound)
    b_ih = jax.random.uniform(kb1, (3 * H,), jnp.float32, -bound, bound)
    b_hh = jax.random.uniform(kb2, (3 * H,), jnp.float32, -bound, bound)

    tokens = jax.random.randint(k_tok, (B, T), 0, vocab_size, dtype=jnp.int32)
    # pack_padded_sequence requires lengths sorted in decreasing order, >= 1.
    lengths = jnp.array([8, 7, 5, 3], dtype=jnp.int32)

    output, hidden = encoder_rnn_forward(
        tokens, lengths, emb_table, w_ih, w_hh, b_ih, b_hh)
    jax.block_until_ready((output, hidden))

    assert output.shape == (B, T, H)
    assert hidden.shape == (1, B, H)

    ref_out, ref_hid = reference_forward(
        tokens, lengths, emb_table, w_ih, w_hh, b_ih, b_hh)
    assert jnp.allclose(output, ref_out, atol=2e-2, rtol=2e-2)
    assert jnp.allclose(hidden, ref_hid, atol=2e-2, rtol=2e-2)
    print("KERNEL_OK")
</pallas_src>

<mosaic_0001>
module attributes {stable_mosaic.version = 11 : i64} {
  func.func @_gru_block_kernel(%arg0: i32, %arg1: i32, %arg2: memref<8x8x384xbf16, #tpu.memory_space<vmem>>, %arg3: memref<128x384xbf16, #tpu.memory_space<vmem>>, %arg4: memref<1x128xf32, #tpu.memory_space<vmem>>, %arg5: memref<8x128xi32, #tpu.memory_space<vmem>>, %arg6: memref<8x8x128xbf16, #tpu.memory_space<vmem>>, %arg7: memref<1x8x128xf32, #tpu.memory_space<vmem>>, %arg8: memref<8x128xf32, #tpu.memory_space<vmem>>) attributes {dimension_semantics = [#tpu.dimension_semantics<parallel>, #tpu.dimension_semantics<arbitrary>], iteration_bounds = array<i64: 1, 1>, scalar_prefetch = 0 : i64, scratch_operands = 1 : i64, tpu.core_type = #tpu.core_type<tc>, window_params = [{transform_indices = @transform_0, window_bounds = array<i64: 8, 8, 384>}, {pipeline_mode = #tpu.pipeline_mode<synchronous>, transform_indices = @transform_1, window_bounds = array<i64: 128, 384>}, {pipeline_mode = #tpu.pipeline_mode<synchronous>, transform_indices = @transform_2, window_bounds = array<i64: 1, 128>}, {transform_indices = @transform_3, window_bounds = array<i64: 8, 128>}, {transform_indices = @transform_4, window_bounds = array<i64: 8, 8, 128>}, {transform_indices = @transform_5, window_bounds = array<i64: 1, 8, 128>}]} {
    %c0_i32 = arith.constant 0 : i32
    %0 = arith.cmpi eq, %arg1, %c0_i32 : i32
    %1 = arith.extui %0 : i1 to i32
    %c0_i32_0 = arith.constant 0 : i32
    %2 = arith.cmpi ne, %1, %c0_i32_0 : i32
    scf.if %2 {
      %cst_77 = arith.constant 0.000000e+00 : f32
      %396 = vector.broadcast %cst_77 : f32 to vector<8x128xf32>
      %c0_78 = arith.constant 0 : index
      %c0_79 = arith.constant 0 : index
      %397 = vector.load %arg8[%c0_78, %c0_79] : memref<8x128xf32, #tpu.memory_space<vmem>>, vector<8x128xf32>
      tpu.vector_store %arg8[%c0_78, %c0_79], %396 {strides = array<i32>} : memref<8x128xf32, #tpu.memory_space<vmem>>, vector<8x128xf32>,
    } else {
    }
    %c0 = arith.constant 0 : index
    %c0_1 = arith.constant 0 : index
    %3 = vector.load %arg3[%c0, %c0_1] : memref<128x384xbf16, #tpu.memory_space<vmem>>, vector<128x384xbf16>
    %c0_2 = arith.constant 0 : index
    %c0_3 = arith.constant 0 : index
    %4 = vector.load %arg4[%c0_2, %c0_3] : memref<1x128xf32, #tpu.memory_space<vmem>>, vector<1x128xf32>
    %c0_4 = arith.constant 0 : index
    %c0_5 = arith.constant 0 : index
    %5 = vector.load %arg5[%c0_4, %c0_5] : memref<8x128xi32, #tpu.memory_space<vmem>>, vector<8x128xi32>
    %c8_i32 = arith.constant 8 : i32
    %6 = arith.muli %arg1, %c8_i32 : i32
    %c0_6 = arith.constant 0 : index
    %c0_7 = arith.constant 0 : index
    %7 = vector.load %arg8[%c0_6, %c0_7] : memref<8x128xf32, #tpu.memory_space<vmem>>, vector<8x128xf32>
    %c0_i32_8 = arith.constant 0 : i32
    %8 = arith.truncf %7 : vector<8x128xf32> to vector<8x128xbf16>
    %cst = arith.constant dense<0.000000e+00> : vector<8x384xf32>
    %9 = tpu.matmul %8, %3, %cst {dimension_numbers = #tpu.dot_dimension_numbers<[1], [0], [0], [1], [0, 0, 1, 1], [], []>} : vector<8x128xbf16>, vector<128x384xbf16>, vector<8x384xf32> -> vector<8x384xf32>
    %10 = arith.index_cast %c0_i32_8 : i32 to index
    %c0_9 = arith.constant 0 : index
    %c0_10 = arith.constant 0 : index
    %11 = vector.load %arg2[%10, %c0_9, %c0_10] : memref<8x8x384xbf16, #tpu.memory_space<vmem>>, vector<1x8x384xbf16>
    %12 = vector.shape_cast %11 : vector<1x8x384xbf16> to vector<8x384xbf16>
    %13 = arith.extf %12 : vector<8x384xbf16> to vector<8x384xf32>
    %14 = vector.extract_strided_slice %13 {offsets = [0, 0], sizes = [8, 128], strides = [1, 1]} : vector<8x384xf32> to vector<8x128xf32>
    %15 = vector.extract_strided_slice %13 {offsets = [0, 128], sizes = [8, 128], strides = [1, 1]} : vector<8x384xf32> to vector<8x128xf32>
    %16 = vector.extract_strided_slice %13 {offsets = [0, 256], sizes = [8, 128], strides = [1, 1]} : vector<8x384xf32> to vector<8x128xf32>
    %17 = vector.extract_strided_slice %9 {offsets = [0, 0], sizes = [8, 128], strides = [1, 1]} : vector<8x384xf32> to vector<8x128xf32>
    %18 = vector.extract_strided_slice %9 {offsets = [0, 128], sizes = [8, 128], strides = [1, 1]} : vector<8x384xf32> to vector<8x128xf32>
    %19 = vector.extract_strided_slice %9 {offsets = [0, 256], sizes = [8, 128], strides = [1, 1]} : vector<8x384xf32> to vector<8x128xf32>
    %20 = arith.addf %14, %17 : vector<8x128xf32>
    %21 = arith.negf %20 : vector<8x128xf32>
    %22 = math.exp %21 : vector<8x128xf32>
    %cst_11 = arith.constant 1.000000e+00 : f32
    %23 = vector.broadcast %cst_11 : f32 to vector<8x128xf32>
    %24 = arith.addf %23, %22 : vector<8x128xf32>
    %25 = arith.divf %23, %24 : vector<8x128xf32>
    %26 = arith.addf %15, %18 : vector<8x128xf32>
    %27 = arith.negf %26 : vector<8x128xf32>
    %28 = math.exp %27 : vector<8x128xf32>
    %cst_12 = arith.constant 1.000000e+00 : f32
    %29 = vector.broadcast %cst_12 : f32 to vector<8x128xf32>
    %30 = arith.addf %29, %28 : vector<8x128xf32>
    %31 = arith.divf %29, %30 : vector<8x128xf32>
    %32 = vector.broadcast %4 : vector<1x128xf32> to vector<8x128xf32>
    %33 = arith.addf %19, %32 : vector<8x128xf32>
    %34 = arith.mulf %25, %33 : vector<8x128xf32>
    %35 = arith.addf %16, %34 : vector<8x128xf32>
    %36 = math.tanh %35 : vector<8x128xf32>
    %cst_13 = arith.constant 1.000000e+00 : f32
    %37 = vector.broadcast %cst_13 : f32 to vector<8x128xf32>
    %38 = arith.subf %37, %31 : vector<8x128xf32>
    %39 = arith.mulf %38, %36 : vector<8x128xf32>
    %40 = arith.mulf %31, %7 : vector<8x128xf32>
    %41 = arith.addf %39, %40 : vector<8x128xf32>
    %42 = arith.addi %6, %c0_i32_8 : i32
    %43 = vector.broadcast %42 : i32 to vector<8x128xi32>
    %44 = arith.cmpi slt, %43, %5 : vector<8x128xi32>
    %45 = arith.extui %44 : vector<8x128xi1> to vector<8x128xi32>
    %46 = arith.sitofp %45 : vector<8x128xi32> to vector<8x128xf32>
    %47 = arith.subf %41, %7 : vector<8x128xf32>
    %48 = arith.mulf %46, %47 : vector<8x128xf32>
    %49 = arith.addf %7, %48 : vector<8x128xf32>
    %50 = arith.mulf %46, %41 : vector<8x128xf32>
    %51 = arith.truncf %50 : vector<8x128xf32> to vector<8x128xbf16>
    %52 = arith.index_cast %c0_i32_8 : i32 to index
    %c0_14 = arith.constant 0 : index
    %c0_15 = arith.constant 0 : index
    %53 = vector.load %arg6[%52, %c0_14, %c0_15] : memref<8x8x128xbf16, #tpu.memory_space<vmem>>, vector<1x8x128xbf16>
    %54 = vector.shape_cast %53 : vector<1x8x128xbf16> to vector<8x128xbf16>
    %55 = vector.shape_cast %51 : vector<8x128xbf16> to vector<1x8x128xbf16>
    tpu.vector_store %arg6[%52, %c0_14, %c0_15], %55 {strides = array<i32>} : memref<8x8x128xbf16, #tpu.memory_space<vmem>>, vector<1x8x128xbf16>,
    %c1_i32 = arith.constant 1 : i32
    %56 = arith.truncf %49 : vector<8x128xf32> to vector<8x128xbf16>
    %cst_16 = arith.constant dense<0.000000e+00> : vector<8x384xf32>
    %57 = tpu.matmul %56, %3, %cst_16 {dimension_numbers = #tpu.dot_dimension_numbers<[1], [0], [0], [1], [0, 0, 1, 1], [], []>} : vector<8x128xbf16>, vector<128x384xbf16>, vector<8x384xf32> -> vector<8x384xf32>
    %58 = arith.index_cast %c1_i32 : i32 to index
    %c0_17 = arith.constant 0 : index
    %c0_18 = arith.constant 0 : index
    %59 = vector.load %arg2[%58, %c0_17, %c0_18] : memref<8x8x384xbf16, #tpu.memory_space<vmem>>, vector<1x8x384xbf16>
    %60 = vector.shape_cast %59 : vector<1x8x384xbf16> to vector<8x384xbf16>
    %61 = arith.extf %60 : vector<8x384xbf16> to vector<8x384xf32>
    %62 = vector.extract_strided_slice %61 {offsets = [0, 0], sizes = [8, 128], strides = [1, 1]} : vector<8x384xf32> to vector<8x128xf32>
    %63 = vector.extract_strided_slice %61 {offsets = [0, 128], sizes = [8, 128], strides = [1, 1]} : vector<8x384xf32> to vector<8x128xf32>
    %64 = vector.extract_strided_slice %61 {offsets = [0, 256], sizes = [8, 128], strides = [1, 1]} : vector<8x384xf32> to vector<8x128xf32>
    %65 = vector.extract_strided_slice %57 {offsets = [0, 0], sizes = [8, 128], strides = [1, 1]} : vector<8x384xf32> to vector<8x128xf32>
    %66 = vector.extract_strided_slice %57 {offsets = [0, 128], sizes = [8, 128], strides = [1, 1]} : vector<8x384xf32> to vector<8x128xf32>
    %67 = vector.extract_strided_slice %57 {offsets = [0, 256], sizes = [8, 128], strides = [1, 1]} : vector<8x384xf32> to vector<8x128xf32>
    %68 = arith.addf %62, %65 : vector<8x128xf32>
    %69 = arith.negf %68 : vector<8x128xf32>
    %70 = math.exp %69 : vector<8x128xf32>
    %cst_19 = arith.constant 1.000000e+00 : f32
    %71 = vector.broadcast %cst_19 : f32 to vector<8x128xf32>
    %72 = arith.addf %71, %70 : vector<8x128xf32>
    %73 = arith.divf %71, %72 : vector<8x128xf32>
    %74 = arith.addf %63, %66 : vector<8x128xf32>
    %75 = arith.negf %74 : vector<8x128xf32>
    %76 = math.exp %75 : vector<8x128xf32>
    %cst_20 = arith.constant 1.000000e+00 : f32
    %77 = vector.broadcast %cst_20 : f32 to vector<8x128xf32>
    %78 = arith.addf %77, %76 : vector<8x128xf32>
    %79 = arith.divf %77, %78 : vector<8x128xf32>
    %80 = vector.broadcast %4 : vector<1x128xf32> to vector<8x128xf32>
    %81 = arith.addf %67, %80 : vector<8x128xf32>
    %82 = arith.mulf %73, %81 : vector<8x128xf32>
    %83 = arith.addf %64, %82 : vector<8x128xf32>
    %84 = math.tanh %83 : vector<8x128xf32>
    %cst_21 = arith.constant 1.000000e+00 : f32
    %85 = vector.broadcast %cst_21 : f32 to vector<8x128xf32>
    %86 = arith.subf %85, %79 : vector<8x128xf32>
    %87 = arith.mulf %86, %84 : vector<8x128xf32>
    %88 = arith.mulf %79, %49 : vector<8x128xf32>
    %89 = arith.addf %87, %88 : vector<8x128xf32>
    %90 = arith.addi %6, %c1_i32 : i32
    %91 = vector.broadcast %90 : i32 to vector<8x128xi32>
    %92 = arith.cmpi slt, %91, %5 : vector<8x128xi32>
    %93 = arith.extui %92 : vector<8x128xi1> to vector<8x128xi32>
    %94 = arith.sitofp %93 : vector<8x128xi32> to vector<8x128xf32>
    %95 = arith.subf %89, %49 : vector<8x128xf32>
    %96 = arith.mulf %94, %95 : vector<8x128xf32>
    %97 = arith.addf %49, %96 : vector<8x128xf32>
    %98 = arith.mulf %94, %89 : vector<8x128xf32>
    %99 = arith.truncf %98 : vector<8x128xf32> to vector<8x128xbf16>
    %100 = arith.index_cast %c1_i32 : i32 to index
    %c0_22 = arith.constant 0 : index
    %c0_23 = arith.constant 0 : index
    %101 = vector.load %arg6[%100, %c0_22, %c0_23] : memref<8x8x128xbf16, #tpu.memory_space<vmem>>, vector<1x8x128xbf16>
    %102 = vector.shape_cast %101 : vector<1x8x128xbf16> to vector<8x128xbf16>
    %103 = vector.shape_cast %99 : vector<8x128xbf16> to vector<1x8x128xbf16>
    tpu.vector_store %arg6[%100, %c0_22, %c0_23], %103 {strides = array<i32>} : memref<8x8x128xbf16, #tpu.memory_space<vmem>>, vector<1x8x128xbf16>,
    %c2_i32 = arith.constant 2 : i32
    %104 = arith.truncf %97 : vector<8x128xf32> to vector<8x128xbf16>
    %cst_24 = arith.constant dense<0.000000e+00> : vector<8x384xf32>
    %105 = tpu.matmul %104, %3, %cst_24 {dimension_numbers = #tpu.dot_dimension_numbers<[1], [0], [0], [1], [0, 0, 1, 1], [], []>} : vector<8x128xbf16>, vector<128x384xbf16>, vector<8x384xf32> -> vector<8x384xf32>
    %106 = arith.index_cast %c2_i32 : i32 to index
    %c0_25 = arith.constant 0 : index
    %c0_26 = arith.constant 0 : index
    %107 = vector.load %arg2[%106, %c0_25, %c0_26] : memref<8x8x384xbf16, #tpu.memory_space<vmem>>, vector<1x8x384xbf16>
    %108 = vector.shape_cast %107 : vector<1x8x384xbf16> to vector<8x384xbf16>
    %109 = arith.extf %108 : vector<8x384xbf16> to vector<8x384xf32>
    %110 = vector.extract_strided_slice %109 {offsets = [0, 0], sizes = [8, 128], strides = [1, 1]} : vector<8x384xf32> to vector<8x128xf32>
    %111 = vector.extract_strided_slice %109 {offsets = [0, 128], sizes = [8, 128], strides = [1, 1]} : vector<8x384xf32> to vector<8x128xf32>
    %112 = vector.extract_strided_slice %109 {offsets = [0, 256], sizes = [8, 128], strides = [1, 1]} : vector<8x384xf32> to vector<8x128xf32>
    %113 = vector.extract_strided_slice %105 {offsets = [0, 0], sizes = [8, 128], strides = [1, 1]} : vector<8x384xf32> to vector<8x128xf32>
    %114 = vector.extract_strided_slice %105 {offsets = [0, 128], sizes = [8, 128], strides = [1, 1]} : vector<8x384xf32> to vector<8x128xf32>
    %115 = vector.extract_strided_slice %105 {offsets = [0, 256], sizes = [8, 128], strides = [1, 1]} : vector<8x384xf32> to vector<8x128xf32>
    %116 = arith.addf %110, %113 : vector<8x128xf32>
    %117 = arith.negf %116 : vector<8x128xf32>
    %118 = math.exp %117 : vector<8x128xf32>
    %cst_27 = arith.constant 1.000000e+00 : f32
    %119 = vector.broadcast %cst_27 : f32 to vector<8x128xf32>
    %120 = arith.addf %119, %118 : vector<8x128xf32>
    %121 = arith.divf %119, %120 : vector<8x128xf32>
    %122 = arith.addf %111, %114 : vector<8x128xf32>
    %123 = arith.negf %122 : vector<8x128xf32>
    %124 = math.exp %123 : vector<8x128xf32>
    %cst_28 = arith.constant 1.000000e+00 : f32
    %125 = vector.broadcast %cst_28 : f32 to vector<8x128xf32>
    %126 = arith.addf %125, %124 : vector<8x128xf32>
    %127 = arith.divf %125, %126 : vector<8x128xf32>
    %128 = vector.broadcast %4 : vector<1x128xf32> to vector<8x128xf32>
    %129 = arith.addf %115, %128 : vector<8x128xf32>
    %130 = arith.mulf %121, %129 : vector<8x128xf32>
    %131 = arith.addf %112, %130 : vector<8x128xf32>
    %132 = math.tanh %131 : vector<8x128xf32>
    %cst_29 = arith.constant 1.000000e+00 : f32
    %133 = vector.broadcast %cst_29 : f32 to vector<8x128xf32>
    %134 = arith.subf %133, %127 : vector<8x128xf32>
    %135 = arith.mulf %134, %132 : vector<8x128xf32>
    %136 = arith.mulf %127, %97 : vector<8x128xf32>
    %137 = arith.addf %135, %136 : vector<8x128xf32>
    %138 = arith.addi %6, %c2_i32 : i32
    %139 = vector.broadcast %138 : i32 to vector<8x128xi32>
    %140 = arith.cmpi slt, %139, %5 : vector<8x128xi32>
    %141 = arith.extui %140 : vector<8x128xi1> to vector<8x128xi32>
    %142 = arith.sitofp %141 : vector<8x128xi32> to vector<8x128xf32>
    %143 = arith.subf %137, %97 : vector<8x128xf32>
    %144 = arith.mulf %142, %143 : vector<8x128xf32>
    %145 = arith.addf %97, %144 : vector<8x128xf32>
    %146 = arith.mulf %142, %137 : vector<8x128xf32>
    %147 = arith.truncf %146 : vector<8x128xf32> to vector<8x128xbf16>
    %148 = arith.index_cast %c2_i32 : i32 to index
    %c0_30 = arith.constant 0 : index
    %c0_31 = arith.constant 0 : index
    %149 = vector.load %arg6[%148, %c0_30, %c0_31] : memref<8x8x128xbf16, #tpu.memory_space<vmem>>, vector<1x8x128xbf16>
    %150 = vector.shape_cast %149 : vector<1x8x128xbf16> to vector<8x128xbf16>
    %151 = vector.shape_cast %147 : vector<8x128xbf16> to vector<1x8x128xbf16>
    tpu.vector_store %arg6[%148, %c0_30, %c0_31], %151 {strides = array<i32>} : memref<8x8x128xbf16, #tpu.memory_space<vmem>>, vector<1x8x128xbf16>,
    %c3_i32 = arith.constant 3 : i32
    %152 = arith.truncf %145 : vector<8x128xf32> to vector<8x128xbf16>
    %cst_32 = arith.constant dense<0.000000e+00> : vector<8x384xf32>
    %153 = tpu.matmul %152, %3, %cst_32 {dimension_numbers = #tpu.dot_dimension_numbers<[1], [0], [0], [1], [0, 0, 1, 1], [], []>} : vector<8x128xbf16>, vector<128x384xbf16>, vector<8x384xf32> -> vector<8x384xf32>
    %154 = arith.index_cast %c3_i32 : i32 to index
    %c0_33 = arith.constant 0 : index
    %c0_34 = arith.constant 0 : index
    %155 = vector.load %arg2[%154, %c0_33, %c0_34] : memref<8x8x384xbf16, #tpu.memory_space<vmem>>, vector<1x8x384xbf16>
    %156 = vector.shape_cast %155 : vector<1x8x384xbf16> to vector<8x384xbf16>
    %157 = arith.extf %156 : vector<8x384xbf16> to vector<8x384xf32>
    %158 = vector.extract_strided_slice %157 {offsets = [0, 0], sizes = [8, 128], strides = [1, 1]} : vector<8x384xf32> to vector<8x128xf32>
    %159 = vector.extract_strided_slice %157 {offsets = [0, 128], sizes = [8, 128], strides = [1, 1]} : vector<8x384xf32> to vector<8x128xf32>
    %160 = vector.extract_strided_slice %157 {offsets = [0, 256], sizes = [8, 128], strides = [1, 1]} : vector<8x384xf32> to vector<8x128xf32>
    %161 = vector.extract_strided_slice %153 {offsets = [0, 0], sizes = [8, 128], strides = [1, 1]} : vector<8x384xf32> to vector<8x128xf32>
    %162 = vector.extract_strided_slice %153 {offsets = [0, 128], sizes = [8, 128], strides = [1, 1]} : vector<8x384xf32> to vector<8x128xf32>
    %163 = vector.extract_strided_slice %153 {offsets = [0, 256], sizes = [8, 128], strides = [1, 1]} : vector<8x384xf32> to vector<8x128xf32>
    %164 = arith.addf %158, %161 : vector<8x128xf32>
    %165 = arith.negf %164 : vector<8x128xf32>
    %166 = math.exp %165 : vector<8x128xf32>
    %cst_35 = arith.constant 1.000000e+00 : f32
    %167 = vector.broadcast %cst_35 : f32 to vector<8x128xf32>
    %168 = arith.addf %167, %166 : vector<8x128xf32>
    %169 = arith.divf %167, %168 : vector<8x128xf32>
    %170 = arith.addf %159, %162 : vector<8x128xf32>
    %171 = arith.negf %170 : vector<8x128xf32>
    %172 = math.exp %171 : vector<8x128xf32>
    %cst_36 = arith.constant 1.000000e+00 : f32
    %173 = vector.broadcast %cst_36 : f32 to vector<8x128xf32>
    %174 = arith.addf %173, %172 : vector<8x128xf32>
    %175 = arith.divf %173, %174 : vector<8x128xf32>
    %176 = vector.broadcast %4 : vector<1x128xf32> to vector<8x128xf32>
    %177 = arith.addf %163, %176 : vector<8x128xf32>
    %178 = arith.mulf %169, %177 : vector<8x128xf32>
    %179 = arith.addf %160, %178 : vector<8x128xf32>
    %180 = math.tanh %179 : vector<8x128xf32>
    %cst_37 = arith.constant 1.000000e+00 : f32
    %181 = vector.broadcast %cst_37 : f32 to vector<8x128xf32>
    %182 = arith.subf %181, %175 : vector<8x128xf32>
    %183 = arith.mulf %182, %180 : vector<8x128xf32>
    %184 = arith.mulf %175, %145 : vector<8x128xf32>
    %185 = arith.addf %183, %184 : vector<8x128xf32>
    %186 = arith.addi %6, %c3_i32 : i32
    %187 = vector.broadcast %186 : i32 to vector<8x128xi32>
    %188 = arith.cmpi slt, %187, %5 : vector<8x128xi32>
    %189 = arith.extui %188 : vector<8x128xi1> to vector<8x128xi32>
    %190 = arith.sitofp %189 : vector<8x128xi32> to vector<8x128xf32>
    %191 = arith.subf %185, %145 : vector<8x128xf32>
    %192 = arith.mulf %190, %191 : vector<8x128xf32>
    %193 = arith.addf %145, %192 : vector<8x128xf32>
    %194 = arith.mulf %190, %185 : vector<8x128xf32>
    %195 = arith.truncf %194 : vector<8x128xf32> to vector<8x128xbf16>
    %196 = arith.index_cast %c3_i32 : i32 to index
    %c0_38 = arith.constant 0 : index
    %c0_39 = arith.constant 0 : index
    %197 = vector.load %arg6[%196, %c0_38, %c0_39] : memref<8x8x128xbf16, #tpu.memory_space<vmem>>, vector<1x8x128xbf16>
    %198 = vector.shape_cast %197 : vector<1x8x128xbf16> to vector<8x128xbf16>
    %199 = vector.shape_cast %195 : vector<8x128xbf16> to vector<1x8x128xbf16>
    tpu.vector_store %arg6[%196, %c0_38, %c0_39], %199 {strides = array<i32>} : memref<8x8x128xbf16, #tpu.memory_space<vmem>>, vector<1x8x128xbf16>,
    %c4_i32 = arith.constant 4 : i32
    %200 = arith.truncf %193 : vector<8x128xf32> to vector<8x128xbf16>
    %cst_40 = arith.constant dense<0.000000e+00> : vector<8x384xf32>
    %201 = tpu.matmul %200, %3, %cst_40 {dimension_numbers = #tpu.dot_dimension_numbers<[1], [0], [0], [1], [0, 0, 1, 1], [], []>} : vector<8x128xbf16>, vector<128x384xbf16>, vector<8x384xf32> -> vector<8x384xf32>
    %202 = arith.index_cast %c4_i32 : i32 to index
    %c0_41 = arith.constant 0 : index
    %c0_42 = arith.constant 0 : index
    %203 = vector.load %arg2[%202, %c0_41, %c0_42] : memref<8x8x384xbf16, #tpu.memory_space<vmem>>, vector<1x8x384xbf16>
    %204 = vector.shape_cast %203 : vector<1x8x384xbf16> to vector<8x384xbf16>
    %205 = arith.extf %204 : vector<8x384xbf16> to vector<8x384xf32>
    %206 = vector.extract_strided_slice %205 {offsets = [0, 0], sizes = [8, 128], strides = [1, 1]} : vector<8x384xf32> to vector<8x128xf32>
    %207 = vector.extract_strided_slice %205 {offsets = [0, 128], sizes = [8, 128], strides = [1, 1]} : vector<8x384xf32> to vector<8x128xf32>
    %208 = vector.extract_strided_slice %205 {offsets = [0, 256], sizes = [8, 128], strides = [1, 1]} : vector<8x384xf32> to vector<8x128xf32>
    %209 = vector.extract_strided_slice %201 {offsets = [0, 0], sizes = [8, 128], strides = [1, 1]} : vector<8x384xf32> to vector<8x128xf32>
    %210 = vector.extract_strided_slice %201 {offsets = [0, 128], sizes = [8, 128], strides = [1, 1]} : vector<8x384xf32> to vector<8x128xf32>
    %211 = vector.extract_strided_slice %201 {offsets = [0, 256], sizes = [8, 128], strides = [1, 1]} : vector<8x384xf32> to vector<8x128xf32>
    %212 = arith.addf %206, %209 : vector<8x128xf32>
    %213 = arith.negf %212 : vector<8x128xf32>
    %214 = math.exp %213 : vector<8x128xf32>
    %cst_43 = arith.constant 1.000000e+00 : f32
    %215 = vector.broadcast %cst_43 : f32 to vector<8x128xf32>
    %216 = arith.addf %215, %214 : vector<8x128xf32>
    %217 = arith.divf %215, %216 : vector<8x128xf32>
    %218 = arith.addf %207, %210 : vector<8x128xf32>
    %219 = arith.negf %218 : vector<8x128xf32>
    %220 = math.exp %219 : vector<8x128xf32>
    %cst_44 = arith.constant 1.000000e+00 : f32
    %221 = vector.broadcast %cst_44 : f32 to vector<8x128xf32>
    %222 = arith.addf %221, %220 : vector<8x128xf32>
    %223 = arith.divf %221, %222 : vector<8x128xf32>
    %224 = vector.broadcast %4 : vector<1x128xf32> to vector<8x128xf32>
    %225 = arith.addf %211, %224 : vector<8x128xf32>
    %226 = arith.mulf %217, %225 : vector<8x128xf32>
    %227 = arith.addf %208, %226 : vector<8x128xf32>
    %228 = math.tanh %227 : vector<8x128xf32>
    %cst_45 = arith.constant 1.000000e+00 : f32
    %229 = vector.broadcast %cst_45 : f32 to vector<8x128xf32>
    %230 = arith.subf %229, %223 : vector<8x128xf32>
    %231 = arith.mulf %230, %228 : vector<8x128xf32>
    %232 = arith.mulf %223, %193 : vector<8x128xf32>
    %233 = arith.addf %231, %232 : vector<8x128xf32>
    %234 = arith.addi %6, %c4_i32 : i32
    %235 = vector.broadcast %234 : i32 to vector<8x128xi32>
    %236 = arith.cmpi slt, %235, %5 : vector<8x128xi32>
    %237 = arith.extui %236 : vector<8x128xi1> to vector<8x128xi32>
    %238 = arith.sitofp %237 : vector<8x128xi32> to vector<8x128xf32>
    %239 = arith.subf %233, %193 : vector<8x128xf32>
    %240 = arith.mulf %238, %239 : vector<8x128xf32>
    %241 = arith.addf %193, %240 : vector<8x128xf32>
    %242 = arith.mulf %238, %233 : vector<8x128xf32>
    %243 = arith.truncf %242 : vector<8x128xf32> to vector<8x128xbf16>
    %244 = arith.index_cast %c4_i32 : i32 to index
    %c0_46 = arith.constant 0 : index
    %c0_47 = arith.constant 0 : index
    %245 = vector.load %arg6[%244, %c0_46, %c0_47] : memref<8x8x128xbf16, #tpu.memory_space<vmem>>, vector<1x8x128xbf16>
    %246 = vector.shape_cast %245 : vector<1x8x128xbf16> to vector<8x128xbf16>
    %247 = vector.shape_cast %243 : vector<8x128xbf16> to vector<1x8x128xbf16>
    tpu.vector_store %arg6[%244, %c0_46, %c0_47], %247 {strides = array<i32>} : memref<8x8x128xbf16, #tpu.memory_space<vmem>>, vector<1x8x128xbf16>,
    %c5_i32 = arith.constant 5 : i32
    %248 = arith.truncf %241 : vector<8x128xf32> to vector<8x128xbf16>
    %cst_48 = arith.constant dense<0.000000e+00> : vector<8x384xf32>
    %249 = tpu.matmul %248, %3, %cst_48 {dimension_numbers = #tpu.dot_dimension_numbers<[1], [0], [0], [1], [0, 0, 1, 1], [], []>} : vector<8x128xbf16>, vector<128x384xbf16>, vector<8x384xf32> -> vector<8x384xf32>
    %250 = arith.index_cast %c5_i32 : i32 to index
    %c0_49 = arith.constant 0 : index
    %c0_50 = arith.constant 0 : index
    %251 = vector.load %arg2[%250, %c0_49, %c0_50] : memref<8x8x384xbf16, #tpu.memory_space<vmem>>, vector<1x8x384xbf16>
    %252 = vector.shape_cast %251 : vector<1x8x384xbf16> to vector<8x384xbf16>
    %253 = arith.extf %252 : vector<8x384xbf16> to vector<8x384xf32>
    %254 = vector.extract_strided_slice %253 {offsets = [0, 0], sizes = [8, 128], strides = [1, 1]} : vector<8x384xf32> to vector<8x128xf32>
    %255 = vector.extract_strided_slice %253 {offsets = [0, 128], sizes = [8, 128], strides = [1, 1]} : vector<8x384xf32> to vector<8x128xf32>
    %256 = vector.extract_strided_slice %253 {offsets = [0, 256], sizes = [8, 128], strides = [1, 1]} : vector<8x384xf32> to vector<8x128xf32>
    %257 = vector.extract_strided_slice %249 {offsets = [0, 0], sizes = [8, 128], strides = [1, 1]} : vector<8x384xf32> to vector<8x128xf32>
    %258 = vector.extract_strided_slice %249 {offsets = [0, 128], sizes = [8, 128], strides = [1, 1]} : vector<8x384xf32> to vector<8x128xf32>
    %259 = vector.extract_strided_slice %249 {offsets = [0, 256], sizes = [8, 128], strides = [1, 1]} : vector<8x384xf32> to vector<8x128xf32>
    %260 = arith.addf %254, %257 : vector<8x128xf32>
    %261 = arith.negf %260 : vector<8x128xf32>
    %262 = math.exp %261 : vector<8x128xf32>
    %cst_51 = arith.constant 1.000000e+00 : f32
    %263 = vector.broadcast %cst_51 : f32 to vector<8x128xf32>
    %264 = arith.addf %263, %262 : vector<8x128xf32>
    %265 = arith.divf %263, %264 : vector<8x128xf32>
    %266 = arith.addf %255, %258 : vector<8x128xf32>
    %267 = arith.negf %266 : vector<8x128xf32>
    %268 = math.exp %267 : vector<8x128xf32>
    %cst_52 = arith.constant 1.000000e+00 : f32
    %269 = vector.broadcast %cst_52 : f32 to vector<8x128xf32>
    %270 = arith.addf %269, %268 : vector<8x128xf32>
    %271 = arith.divf %269, %270 : vector<8x128xf32>
    %272 = vector.broadcast %4 : vector<1x128xf32> to vector<8x128xf32>
    %273 = arith.addf %259, %272 : vector<8x128xf32>
    %274 = arith.mulf %265, %273 : vector<8x128xf32>
    %275 = arith.addf %256, %274 : vector<8x128xf32>
    %276 = math.tanh %275 : vector<8x128xf32>
    %cst_53 = arith.constant 1.000000e+00 : f32
    %277 = vector.broadcast %cst_53 : f32 to vector<8x128xf32>
    %278 = arith.subf %277, %271 : vector<8x128xf32>
    %279 = arith.mulf %278, %276 : vector<8x128xf32>
    %280 = arith.mulf %271, %241 : vector<8x128xf32>
    %281 = arith.addf %279, %280 : vector<8x128xf32>
    %282 = arith.addi %6, %c5_i32 : i32
    %283 = vector.broadcast %282 : i32 to vector<8x128xi32>
    %284 = arith.cmpi slt, %283, %5 : vector<8x128xi32>
    %285 = arith.extui %284 : vector<8x128xi1> to vector<8x128xi32>
    %286 = arith.sitofp %285 : vector<8x128xi32> to vector<8x128xf32>
    %287 = arith.subf %281, %241 : vector<8x128xf32>
    %288 = arith.mulf %286, %287 : vector<8x128xf32>
    %289 = arith.addf %241, %288 : vector<8x128xf32>
    %290 = arith.mulf %286, %281 : vector<8x128xf32>
    %291 = arith.truncf %290 : vector<8x128xf32> to vector<8x128xbf16>
    %292 = arith.index_cast %c5_i32 : i32 to index
    %c0_54 = arith.constant 0 : index
    %c0_55 = arith.constant 0 : index
    %293 = vector.load %arg6[%292, %c0_54, %c0_55] : memref<8x8x128xbf16, #tpu.memory_space<vmem>>, vector<1x8x128xbf16>
    %294 = vector.shape_cast %293 : vector<1x8x128xbf16> to vector<8x128xbf16>
    %295 = vector.shape_cast %291 : vector<8x128xbf16> to vector<1x8x128xbf16>
    tpu.vector_store %arg6[%292, %c0_54, %c0_55], %295 {strides = array<i32>} : memref<8x8x128xbf16, #tpu.memory_space<vmem>>, vector<1x8x128xbf16>,
    %c6_i32 = arith.constant 6 : i32
    %296 = arith.truncf %289 : vector<8x128xf32> to vector<8x128xbf16>
    %cst_56 = arith.constant dense<0.000000e+00> : vector<8x384xf32>
    %297 = tpu.matmul %296, %3, %cst_56 {dimension_numbers = #tpu.dot_dimension_numbers<[1], [0], [0], [1], [0, 0, 1, 1], [], []>} : vector<8x128xbf16>, vector<128x384xbf16>, vector<8x384xf32> -> vector<8x384xf32>
    %298 = arith.index_cast %c6_i32 : i32 to index
    %c0_57 = arith.constant 0 : index
    %c0_58 = arith.constant 0 : index
    %299 = vector.load %arg2[%298, %c0_57, %c0_58] : memref<8x8x384xbf16, #tpu.memory_space<vmem>>, vector<1x8x384xbf16>
    %300 = vector.shape_cast %299 : vector<1x8x384xbf16> to vector<8x384xbf16>
    %301 = arith.extf %300 : vector<8x384xbf16> to vector<8x384xf32>
    %302 = vector.extract_strided_slice %301 {offsets = [0, 0], sizes = [8, 128], strides = [1, 1]} : vector<8x384xf32> to vector<8x128xf32>
    %303 = vector.extract_strided_slice %301 {offsets = [0, 128], sizes = [8, 128], strides = [1, 1]} : vector<8x384xf32> to vector<8x128xf32>
    %304 = vector.extract_strided_slice %301 {offsets = [0, 256], sizes = [8, 128], strides = [1, 1]} : vector<8x384xf32> to vector<8x128xf32>
    %305 = vector.extract_strided_slice %297 {offsets = [0, 0], sizes = [8, 128], strides = [1, 1]} : vector<8x384xf32> to vector<8x128xf32>
    %306 = vector.extract_strided_slice %297 {offsets = [0, 128], sizes = [8, 128], strides = [1, 1]} : vector<8x384xf32> to vector<8x128xf32>
    %307 = vector.extract_strided_slice %297 {offsets = [0, 256], sizes = [8, 128], strides = [1, 1]} : vector<8x384xf32> to vector<8x128xf32>
    %308 = arith.addf %302, %305 : vector<8x128xf32>
    %309 = arith.negf %308 : vector<8x128xf32>
    %310 = math.exp %309 : vector<8x128xf32>
    %cst_59 = arith.constant 1.000000e+00 : f32
    %311 = vector.broadcast %cst_59 : f32 to vector<8x128xf32>
    %312 = arith.addf %311, %310 : vector<8x128xf32>
    %313 = arith.divf %311, %312 : vector<8x128xf32>
    %314 = arith.addf %303, %306 : vector<8x128xf32>
    %315 = arith.negf %314 : vector<8x128xf32>
    %316 = math.exp %315 : vector<8x128xf32>
    %cst_60 = arith.constant 1.000000e+00 : f32
    %317 = vector.broadcast %cst_60 : f32 to vector<8x128xf32>
    %318 = arith.addf %317, %316 : vector<8x128xf32>
    %319 = arith.divf %317, %318 : vector<8x128xf32>
    %320 = vector.broadcast %4 : vector<1x128xf32> to vector<8x128xf32>
    %321 = arith.addf %307, %320 : vector<8x128xf32>
    %322 = arith.mulf %313, %321 : vector<8x128xf32>
    %323 = arith.addf %304, %322 : vector<8x128xf32>
    %324 = math.tanh %323 : vector<8x128xf32>
    %cst_61 = arith.constant 1.000000e+00 : f32
    %325 = vector.broadcast %cst_61 : f32 to vector<8x128xf32>
    %326 = arith.subf %325, %319 : vector<8x128xf32>
    %327 = arith.mulf %326, %324 : vector<8x128xf32>
    %328 = arith.mulf %319, %289 : vector<8x128xf32>
    %329 = arith.addf %327, %328 : vector<8x128xf32>
    %330 = arith.addi %6, %c6_i32 : i32
    %331 = vector.broadcast %330 : i32 to vector<8x128xi32>
    %332 = arith.cmpi slt, %331, %5 : vector<8x128xi32>
    %333 = arith.extui %332 : vector<8x128xi1> to vector<8x128xi32>
    %334 = arith.sitofp %333 : vector<8x128xi32> to vector<8x128xf32>
    %335 = arith.subf %329, %289 : vector<8x128xf32>
    %336 = arith.mulf %334, %335 : vector<8x128xf32>
    %337 = arith.addf %289, %336 : vector<8x128xf32>
    %338 = arith.mulf %334, %329 : vector<8x128xf32>
    %339 = arith.truncf %338 : vector<8x128xf32> to vector<8x128xbf16>
    %340 = arith.index_cast %c6_i32 : i32 to index
    %c0_62 = arith.constant 0 : index
    %c0_63 = arith.constant 0 : index
    %341 = vector.load %arg6[%340, %c0_62, %c0_63] : memref<8x8x128xbf16, #tpu.memory_space<vmem>>, vector<1x8x128xbf16>
    %342 = vector.shape_cast %341 : vector<1x8x128xbf16> to vector<8x128xbf16>
    %343 = vector.shape_cast %339 : vector<8x128xbf16> to vector<1x8x128xbf16>
    tpu.vector_store %arg6[%340, %c0_62, %c0_63], %343 {strides = array<i32>} : memref<8x8x128xbf16, #tpu.memory_space<vmem>>, vector<1x8x128xbf16>,
    %c7_i32 = arith.constant 7 : i32
    %344 = arith.truncf %337 : vector<8x128xf32> to vector<8x128xbf16>
    %cst_64 = arith.constant dense<0.000000e+00> : vector<8x384xf32>
    %345 = tpu.matmul %344, %3, %cst_64 {dimension_numbers = #tpu.dot_dimension_numbers<[1], [0], [0], [1], [0, 0, 1, 1], [], []>} : vector<8x128xbf16>, vector<128x384xbf16>, vector<8x384xf32> -> vector<8x384xf32>
    %346 = arith.index_cast %c7_i32 : i32 to index
    %c0_65 = arith.constant 0 : index
    %c0_66 = arith.constant 0 : index
    %347 = vector.load %arg2[%346, %c0_65, %c0_66] : memref<8x8x384xbf16, #tpu.memory_space<vmem>>, vector<1x8x384xbf16>
    %348 = vector.shape_cast %347 : vector<1x8x384xbf16> to vector<8x384xbf16>
    %349 = arith.extf %348 : vector<8x384xbf16> to vector<8x384xf32>
    %350 = vector.extract_strided_slice %349 {offsets = [0, 0], sizes = [8, 128], strides = [1, 1]} : vector<8x384xf32> to vector<8x128xf32>
    %351 = vector.extract_strided_slice %349 {offsets = [0, 128], sizes = [8, 128], strides = [1, 1]} : vector<8x384xf32> to vector<8x128xf32>
    %352 = vector.extract_strided_slice %349 {offsets = [0, 256], sizes = [8, 128], strides = [1, 1]} : vector<8x384xf32> to vector<8x128xf32>
    %353 = vector.extract_strided_slice %345 {offsets = [0, 0], sizes = [8, 128], strides = [1, 1]} : vector<8x384xf32> to vector<8x128xf32>
    %354 = vector.extract_strided_slice %345 {offsets = [0, 128], sizes = [8, 128], strides = [1, 1]} : vector<8x384xf32> to vector<8x128xf32>
    %355 = vector.extract_strided_slice %345 {offsets = [0, 256], sizes = [8, 128], strides = [1, 1]} : vector<8x384xf32> to vector<8x128xf32>
    %356 = arith.addf %350, %353 : vector<8x128xf32>
    %357 = arith.negf %356 : vector<8x128xf32>
    %358 = math.exp %357 : vector<8x128xf32>
    %cst_67 = arith.constant 1.000000e+00 : f32
    %359 = vector.broadcast %cst_67 : f32 to vector<8x128xf32>
    %360 = arith.addf %359, %358 : vector<8x128xf32>
    %361 = arith.divf %359, %360 : vector<8x128xf32>
    %362 = arith.addf %351, %354 : vector<8x128xf32>
    %363 = arith.negf %362 : vector<8x128xf32>
    %364 = math.exp %363 : vector<8x128xf32>
    %cst_68 = arith.constant 1.000000e+00 : f32
    %365 = vector.broadcast %cst_68 : f32 to vector<8x128xf32>
    %366 = arith.addf %365, %364 : vector<8x128xf32>
    %367 = arith.divf %365, %366 : vector<8x128xf32>
    %368 = vector.broadcast %4 : vector<1x128xf32> to vector<8x128xf32>
    %369 = arith.addf %355, %368 : vector<8x128xf32>
    %370 = arith.mulf %361, %369 : vector<8x128xf32>
    %371 = arith.addf %352, %370 : vector<8x128xf32>
    %372 = math.tanh %371 : vector<8x128xf32>
    %cst_69 = arith.constant 1.000000e+00 : f32
    %373 = vector.broadcast %cst_69 : f32 to vector<8x128xf32>
    %374 = arith.subf %373, %367 : vector<8x128xf32>
    %375 = arith.mulf %374, %372 : vector<8x128xf32>
    %376 = arith.mulf %367, %337 : vector<8x128xf32>
    %377 = arith.addf %375, %376 : vector<8x128xf32>
    %378 = arith.addi %6, %c7_i32 : i32
    %379 = vector.broadcast %378 : i32 to vector<8x128xi32>
    %380 = arith.cmpi slt, %379, %5 : vector<8x128xi32>
    %381 = arith.extui %380 : vector<8x128xi1> to vector<8x128xi32>
    %382 = arith.sitofp %381 : vector<8x128xi32> to vector<8x128xf32>
    %383 = arith.subf %377, %337 : vector<8x128xf32>
    %384 = arith.mulf %382, %383 : vector<8x128xf32>
    %385 = arith.addf %337, %384 : vector<8x128xf32>
    %386 = arith.mulf %382, %377 : vector<8x128xf32>
    %387 = arith.truncf %386 : vector<8x128xf32> to vector<8x128xbf16>
    %388 = arith.index_cast %c7_i32 : i32 to index
    %c0_70 = arith.constant 0 : index
    %c0_71 = arith.constant 0 : index
    %389 = vector.load %arg6[%388, %c0_70, %c0_71] : memref<8x8x128xbf16, #tpu.memory_space<vmem>>, vector<1x8x128xbf16>
    %390 = vector.shape_cast %389 : vector<1x8x128xbf16> to vector<8x128xbf16>
    %391 = vector.shape_cast %387 : vector<8x128xbf16> to vector<1x8x128xbf16>
    tpu.vector_store %arg6[%388, %c0_70, %c0_71], %391 {strides = array<i32>} : memref<8x8x128xbf16, #tpu.memory_space<vmem>>, vector<1x8x128xbf16>,
    %c8_i32_72 = arith.constant 8 : i32
    %c0_73 = arith.constant 0 : index
    %c0_74 = arith.constant 0 : index
    %392 = vector.load %arg8[%c0_73, %c0_74] : memref<8x128xf32, #tpu.memory_space<vmem>>, vector<8x128xf32>
    tpu.vector_store %arg8[%c0_73, %c0_74], %385 {strides = array<i32>} : memref<8x128xf32, #tpu.memory_space<vmem>>, vector<8x128xf32>,
    %c0_i32_75 = arith.constant 0 : i32
    %393 = arith.cmpi eq, %arg1, %c0_i32_75 : i32
    %394 = arith.extui %393 : i1 to i32
    %c0_i32_76 = arith.constant 0 : i32
    %395 = arith.cmpi ne, %394, %c0_i32_76 : i32
    scf.if %395 {
      %c0_77 = arith.constant 0 : index
      %c0_78 = arith.constant 0 : index
      %c0_79 = arith.constant 0 : index
      %396 = vector.load %arg7[%c0_77, %c0_78, %c0_79] : memref<1x8x128xf32, #tpu.memory_space<vmem>>, vector<1x8x128xf32>
      %397 = vector.shape_cast %396 : vector<1x8x128xf32> to vector<8x128xf32>
      %398 = vector.shape_cast %385 : vector<8x128xf32> to vector<1x8x128xf32>
      tpu.vector_store %arg7[%c0_77, %c0_78, %c0_79], %398 {strides = array<i32>} : memref<1x8x128xf32, #tpu.memory_space<vmem>>, vector<1x8x128xf32>,
    } else {
    }
    return
  }
  func.func @transform_0(%arg0: i32, %arg1: i32) -> (i32, i32, i32) {
    %c0_i32 = arith.constant 0 : i32
    %c0_i32_0 = arith.constant 0 : i32
    return %arg1, %arg0, %c0_i32 : i32, i32, i32
  }
  func.func @transform_1(%arg0: i32, %arg1: i32) -> (i32, i32) {
    %c0_i32 = arith.constant 0 : i32
    %c0_i32_0 = arith.constant 0 : i32
    %c0_i32_1 = arith.constant 0 : i32
    return %c0_i32, %c0_i32_0 : i32, i32
  }
  func.func @transform_2(%arg0: i32, %arg1: i32) -> (i32, i32) {
    %c0_i32 = arith.constant 0 : i32
    %c0_i32_0 = arith.constant 0 : i32
    %c0_i32_1 = arith.constant 0 : i32
    return %c0_i32, %c0_i32_0 : i32, i32
  }
  func.func @transform_3(%arg0: i32, %arg1: i32) -> (i32, i32) {
    %c0_i32 = arith.constant 0 : i32
    %c0_i32_0 = arith.constant 0 : i32
    return %arg0, %c0_i32 : i32, i32
  }
  func.func @transform_4(%arg0: i32, %arg1: i32) -> (i32, i32, i32) {
    %c0_i32 = arith.constant 0 : i32
    %c0_i32_0 = arith.constant 0 : i32
    return %arg1, %arg0, %c0_i32 : i32, i32, i32
  }
  func.func @transform_5(%arg0: i32, %arg1: i32) -> (i32, i32, i32) {
    %c0_i32 = arith.constant 0 : i32
    %c0_i32_0 = arith.constant 0 : i32
    %c0_i32_1 = arith.constant 0 : i32
    return %c0_i32, %arg0, %c0_i32_0 : i32, i32, i32
  }
}

</mosaic_0001>

<bundles_post_ra>
// kernel: tpu_custom_call.1
= control target key start
LH: loop header
LB: loop body
LE: loop exit
PB: predicated region body
PF: predicated region fallthrough
CT: control target
= control target key end

     0   :  { %11 = vsyncpa [#allocation4], 0  ;;  %s1881_s0 = inlined_call_operand.hbm [shape: bf16[8,8,384], index: 0, kind: input, shape index: {}]   ;;  %s1882_s1 = inlined_call_operand.hbm [shape: bf16[128,384], index: 1, kind: input, shape index: {}]   ;;  %s1883_s2 = inlined_call_operand.vmem [shape: f32[1,128], index: 2, kind: input, shape index: {}]   ;;  %s1884_s3 = inlined_call_operand.hbm [shape: s32[8,128], index: 3, kind: input, shape index: {}]   ;;  %s1885_s4 = inlined_call_operand.hbm [shape: bf16[8,8,128], index: 4, kind: output, shape index: {0}]   ;;  %s1886_s5 = inlined_call_operand.hbm [shape: f32[1,8,128], index: 5, kind: output, shape index: {1}]  }
   0x1   :  { %12 = vsyncpa [#allocation7], 0 }
   0x2   :  { %13 = vsyncpa [#allocation5], 0 }
   0x3   :  { %14 = vsyncpa [#allocation11], 0  ;;  %s32_s20 = sshll.u32 %s1882_s1, 4  ;;  %s1498_s21 = smov [#allocation6]   ;;  %s33_s20 = int_to_ptr.hbm [resolvable:$true] %s32_s20 }
   0x4   :  { %s34_s22 = sshll.u32 %s1498_s21, 4  ;;  %s19_s25 = sshll.u32 %s1881_s0, 4  ;;  %s35_s22 = int_to_ptr.vmem [resolvable:$true] %s34_s22  ;;  %s20_s25 = int_to_ptr.hbm [resolvable:$true] %s19_s25 }
   0x5   :  { %s1499_s26 = smov 192   ;;  %s1500_s27 = smov 12  }
   0x6   :  { %40 = dma.hbm_to_vmem [thread:$0]  %s33_s20, 3072, %s35_s22, [#allocation7], %s1499_s26, %s1499_s26, %s1500_s27  }
   0x7   :  { %s1501_s28 = smov [#allocation3]   ;;  %s48_s7 = sshll.u32 %s1884_s3, 4  ;;  %s49_s7 = int_to_ptr.hbm [resolvable:$true] %s48_s7 }
   0x8   :  { %s21_s29 = sshll.u32 %s1501_s28, 4  ;;  %s1502_s1 = smov [#allocation8]   ;;  %s22_s29 = int_to_ptr.vmem [resolvable:$true] %s21_s29 }
   0x9   :  { %27 = dma.hbm_to_vmem [thread:$0]  %s20_s25, 1536, %s22_s29, [#allocation4], %s1499_s26, %s1499_s26, %s1500_s27  }
   0xa   :  { %s50_s8 = sshll.u32 %s1502_s1, 4  ;;  %s51_s8 = int_to_ptr.vmem [resolvable:$true] %s50_s8 }
   0xb   :  { %53 = dma.hbm_to_vmem [thread:$0]  %s49_s7, 128, %s51_s8, [#allocation7]  }
   0xc   :  { %1490 = dma.done.wait [#allocation4], 1536  }
   0xd   :  { %1491 = vsyncadd [#allocation4], 4294965760 }
   0xe   :  { %1492 = dma.done.wait [#allocation7], 3200  }
   0xf   :  { %1493 = vsyncadd [#allocation7], 4294964096  ;;  %v1210_v0 = vld [vmem:[#allocation6 + $0xa8] sm:$0xf]  ;;  %v1274_v1 = vld [vmem:[#allocation6 + $0xb0] sm:$0xf0] }
  0x10   :  { %v1273_v2 = vld [vmem:[#allocation6 + $0xac] sm:$0xf]  ;;  %v1548_v3 = vor.u32 %v1274_v1, %v1210_v0  ;;  %v1212_v4 = vld [vmem:[#allocation6 + $0xb4] sm:$0xf0]  ;;  %v1198_v5 = vld [vmem:[#allocation6 + $0x90] sm:$0xf] }
  0x11   :  { %v1271_v6 = vld [vmem:[#allocation6 + $0x98] sm:$0xf0]  ;;  %v1550_v7 = vor.u32 %v1273_v2, %v1212_v4  ;;  %v1270_v8 = vld [vmem:[#allocation6 + $0x94] sm:$0xf]  ;;  %v1200_v9 = vld [vmem:[#allocation6 + $0x9c] sm:$0xf0] }
  0x12   :  { %236 = vmatpush.bf16.msra.mxu0 %v1548_v3  ;;  %v1553_v10 = vor.u32 %v1271_v6, %v1198_v5  ;;  %342 = vmatpush.bf16.msra.mxu3 %v1548_v3  ;;  %v1557_v11 = vor.u32 %v1270_v8, %v1200_v9  ;;  %v1186_v12 = vld [vmem:[#allocation6 + $0x78] sm:$0xf]  ;;  %v1268_v13 = vld [vmem:[#allocation6 + $0x80] sm:$0xf0]  ;;  %v1267_v14 = vld [vmem:[#allocation6 + $0x7c] sm:$0xf] }
  0x13   :  { %249 = vmatpush.bf16.msra.mxu1 %v1550_v7  ;;  %v1188_v15 = vld [vmem:[#allocation6 + $0x84] sm:$0xf0]  ;;  %v1218_v16 = vld [vmem:[#allocation6 + $0xb0] sm:$0xf]  ;;  %v1275_v17 = vld [vmem:[#allocation6 + $0xb8] sm:$0xf0]  ;;  %v1562_v19 = vor.u32 %v1268_v13, %v1186_v12 }
  0x14   :  { %v1559_v18 = vor.u32 %v1275_v17, %v1218_v16  ;;  %v1206_v20 = vld [vmem:[#allocation6 + $0x98] sm:$0xf]  ;;  %v1272_v21 = vld [vmem:[#allocation6 + $0xa0] sm:$0xf0]  ;;  %v1566_v22 = vor.u32 %v1267_v14, %v1188_v15  ;;  %v1174_v23 = vld [vmem:[#allocation6 + $0x60] sm:$0xf] }
  0x15   :  { %v1265_v24 = vld [vmem:[#allocation6 + $0x68] sm:$0xf0]  ;;  %v1264_v25 = vld [vmem:[#allocation6 + $0x64] sm:$0xf]  ;;  %v1569_v26 = vor.u32 %v1272_v21, %v1206_v20  ;;  %v1176_v27 = vld [vmem:[#allocation6 + $0x6c] sm:$0xf0] }
  0x16   :  { %237 = vmatpush.bf16.msra.mxu0 %v1553_v10  ;;  %343 = vmatpush.bf16.msra.mxu3 %v1553_v10  ;;  %v1194_v28 = vld [vmem:[#allocation6 + $0x80] sm:$0xf]  ;;  %v1269_v29 = vld [vmem:[#allocation6 + $0x88] sm:$0xf0]  ;;  %v1572_v30 = vor.u32 %v1265_v24, %v1174_v23  ;;  %v1576_v31 = vor.u32 %v1264_v25, %v1176_v27  ;;  %v1162_v32 = vld [vmem:[#allocation6 + $0x48] sm:$0xf] }
  0x17   :  { %250 = vmatpush.bf16.msra.mxu1 %v1557_v11  ;;  %262 = vmatpush.bf16.msra.mxu2 %v1559_v18  ;;  %v1262_v33 = vld [vmem:[#allocation6 + $0x50] sm:$0xf0]  ;;  %v1261_v34 = vld [vmem:[#allocation6 + $0x4c] sm:$0xf]  ;;  %v1579_v35 = vor.u32 %v1269_v29, %v1194_v28  ;;  %v1164_v36 = vld [vmem:[#allocation6 + $0x54] sm:$0xf0] }
  0x18   :  { %v1182_v37 = vld [vmem:[#allocation6 + $0x68] sm:$0xf]  ;;  %v1266_v38 = vld [vmem:[#allocation6 + $0x70] sm:$0xf0]  ;;  %v1582_v39 = vor.u32 %v1262_v33, %v1162_v32  ;;  %v1150_v40 = vld [vmem:[#allocation6 + $0x30] sm:$0xf]  ;;  %v1586_v41 = vor.u32 %v1261_v34, %v1164_v36 }
  0x19   :  { %v1259_v42 = vld [vmem:[#allocation6 + $0x38] sm:$0xf0]  ;;  %v1258_v43 = vld [vmem:[#allocation6 + $0x34] sm:$0xf]  ;;  %v1589_v44 = vor.u32 %v1266_v38, %v1182_v37  ;;  %v1152_v45 = vld [vmem:[#allocation6 + $0x3c] sm:$0xf0] }
  0x1a   :  { %238 = vmatpush.bf16.msra.mxu0 %v1562_v19  ;;  %344 = vmatpush.bf16.msra.mxu3 %v1562_v19  ;;  %v1170_v46 = vld [vmem:[#allocation6 + $0x50] sm:$0xf]  ;;  %v1263_v47 = vld [vmem:[#allocation6 + $0x58] sm:$0xf0]  ;;  %v1592_v48 = vor.u32 %v1259_v42, %v1150_v40  ;;  %v1596_v49 = vor.u32 %v1258_v43, %v1152_v45  ;;  %v1138_v50 = vld [vmem:[#allocation6 + $0x18] sm:$0xf] }
  0x1b   :  { %251 = vmatpush.bf16.msra.mxu1 %v1566_v22  ;;  %263 = vmatpush.bf16.msra.mxu2 %v1569_v26  ;;  %v1256_v51 = vld [vmem:[#allocation6 + $0x20] sm:$0xf0]  ;;  %v1255_v52 = vld [vmem:[#allocation6 + $0x1c] sm:$0xf]  ;;  %v1599_v53 = vor.u32 %v1263_v47, %v1170_v46  ;;  %v1140_v54 = vld [vmem:[#allocation6 + $0x24] sm:$0xf0] }
  0x1c   :  { %v1158_v55 = vld [vmem:[#allocation6 + $0x38] sm:$0xf]  ;;  %v1260_v56 = vld [vmem:[#allocation6 + $0x40] sm:$0xf0]  ;;  %v1602_v57 = vor.u32 %v1256_v51, %v1138_v50  ;;  %v1606_v58 = vor.u32 %v1255_v52, %v1140_v54  ;;  %v1126_v59 = vld [vmem:[#allocation6] sm:$0xf] }
  0x1d   :  { %v1253_v60 = vld [vmem:[#allocation6 + $0x8] sm:$0xf0]  ;;  %v1252_v61 = vld [vmem:[#allocation6 + $0x4] sm:$0xf]  ;;  %v1609_v62 = vor.u32 %v1260_v56, %v1158_v55  ;;  %v1128_v63 = vld [vmem:[#allocation6 + $0xc] sm:$0xf0] }
  0x1e   :  { %239 = vmatpush.bf16.msra.mxu0 %v1572_v30  ;;  %345 = vmatpush.bf16.msra.mxu3 %v1572_v30  ;;  %v1146_v0 = vld [vmem:[#allocation6 + $0x20] sm:$0xf]  ;;  %v1257_v1 = vld [vmem:[#allocation6 + $0x28] sm:$0xf0]  ;;  %v1612_v2 = vor.u32 %v1253_v60, %v1126_v59  ;;  %v1616_v4 = vor.u32 %v1252_v61, %v1128_v63  ;;  %v1134_v6 = vld [vmem:[#allocation6 + $0x8] sm:$0xf] }
  0x1f   :  { %252 = vmatpush.bf16.msra.mxu1 %v1576_v31  ;;  %264 = vmatpush.bf16.msra.mxu2 %v1579_v35  ;;  %v1619_v5 = vor.u32 %v1257_v1, %v1146_v0  ;;  %v1254_v8 = vld [vmem:[#allocation6 + $0x10] sm:$0xf0]  ;;  %v1503_v12 = vmov 0.0|0.0   ;;  %v275_v13 = vld [vmem:[#allocation3] sm:$0xff]  ;;  %v276_v54 = vld [vmem:[#allocation3 + $0x8] sm:$0xf] }
  0x20   :  { %v1625_v9 = vor.u32 %v1254_v8, %v1134_v6  ;;  %v277_v14 = vunpack.c.l.bf16 %v275_v13  ;;  %v278_v15 = vunpack.c.h.bf16 %v275_v13  ;;  %v1687_v45 = vld [vmem:[%s1883_s2] ss:$0 sm:$0xff]  ;;  %v279_v60 = vunpack.c.l.bf16 %v276_v54  ;;  %s1094_s14 = sshll.u32 %s1885_s4, 4  ;;  %s1506_s15 = smov [#allocation10]   ;;  %s1095_s14 = int_to_ptr.hbm [resolvable:$true] %s1094_s14 }
  0x21   :  { %s1106_s16 = sshll.u32 %s1506_s15, 4  ;;  %s1108_s19 = sshll.u32 %s1886_s5, 4  ;;  %s1107_s16 = int_to_ptr.vmem [resolvable:$true] %s1106_s16  ;;  %s1109_s19 = int_to_ptr.hbm [resolvable:$true] %s1108_s19 }
  0x22   :  { %240 = vmatpush.bf16.msra.mxu0 %v1582_v39  ;;  %346 = vmatpush.bf16.msra.mxu3 %v1582_v39  ;;  %s1507_s4 = smov 64   ;;  %s1508_s20 = smov 4  }
  0x23   :  { %253 = vmatpush.bf16.msra.mxu1 %v1586_v41  ;;  %265 = vmatpush.bf16.msra.mxu2 %v1589_v44 }
  0x26   :  { %241 = vmatpush.bf16.msra.mxu0 %v1592_v48  ;;  %347 = vmatpush.bf16.msra.mxu3 %v1592_v48 }
  0x27   :  { %254 = vmatpush.bf16.msra.mxu1 %v1596_v49  ;;  %266 = vmatpush.bf16.msra.mxu2 %v1599_v53 }
  0x2a   :  { %242 = vmatpush.bf16.msra.mxu0 %v1602_v57  ;;  %348 = vmatpush.bf16.msra.mxu3 %v1602_v57 }
  0x2b   :  { %255 = vmatpush.bf16.msra.mxu1 %v1606_v58  ;;  %267 = vmatpush.bf16.msra.mxu2 %v1609_v62 }
  0x2e   :  { %243 = vmatpush.bf16.msra.mxu0 %v1612_v2  ;;  %349 = vmatpush.bf16.msra.mxu3 %v1612_v2 }
  0x2f   :  { %256 = vmatpush.bf16.msra.mxu1 %v1616_v4  ;;  %268 = vmatpush.bf16.msra.mxu2 %v1619_v5 }
  0x31   :  { %244 = vmatmul.bf16.vlgmr.msra.gmra.mxu0 %v1503_v12 }
  0x32   :  { %355 = vmatpush.bf16.msrb.mxu0 %v1550_v7  ;;  %461 = vmatpush.bf16.msrb.mxu3 %v1550_v7 }
  0x33   :  { %368 = vmatpush.bf16.msrb.mxu1 %v1559_v18  ;;  %269 = vmatpush.bf16.msra.mxu2 %v1625_v9 }
  0x34   :  { %257 = vmatmul.bf16.vlgmr.msra.gmra.mxu1 %v1503_v12 }
  0x36   :  { %356 = vmatpush.bf16.msrb.mxu0 %v1557_v11  ;;  %462 = vmatpush.bf16.msrb.mxu3 %v1557_v11 }
  0x37   :  { %369 = vmatpush.bf16.msrb.mxu1 %v1569_v26  ;;  %448 = vmatpush.bf16.msrb.mxu2 %v1548_v3 }
  0x38   :  { %270 = vmatmul.bf16.vlgmr.msra.gmra.mxu2 %v1503_v12 }
  0x3a   :  { %357 = vmatpush.bf16.msrb.mxu0 %v1566_v22  ;;  %463 = vmatpush.bf16.msrb.mxu3 %v1566_v22 }
  0x3b   :  { %370 = vmatpush.bf16.msrb.mxu1 %v1579_v35  ;;  %449 = vmatpush.bf16.msrb.mxu2 %v1553_v10 }
  0x3e   :  { %358 = vmatpush.bf16.msrb.mxu0 %v1576_v31  ;;  %464 = vmatpush.bf16.msrb.mxu3 %v1576_v31 }
  0x3f   :  { %371 = vmatpush.bf16.msrb.mxu1 %v1589_v44  ;;  %450 = vmatpush.bf16.msrb.mxu2 %v1562_v19 }
  0x42   :  { %359 = vmatpush.bf16.msrb.mxu0 %v1586_v41  ;;  %465 = vmatpush.bf16.msrb.mxu3 %v1586_v41 }
  0x43   :  { %372 = vmatpush.bf16.msrb.mxu1 %v1599_v53  ;;  %451 = vmatpush.bf16.msrb.mxu2 %v1572_v30 }
  0x46   :  { %360 = vmatpush.bf16.msrb.mxu0 %v1596_v49  ;;  %466 = vmatpush.bf16.msrb.mxu3 %v1596_v49 }
  0x47   :  { %373 = vmatpush.bf16.msrb.mxu1 %v1609_v62  ;;  %452 = vmatpush.bf16.msrb.mxu2 %v1582_v39 }
  0x4a   :  { %361 = vmatpush.bf16.msrb.mxu0 %v1606_v58  ;;  %467 = vmatpush.bf16.msrb.mxu3 %v1606_v58 }
  0x4b   :  { %374 = vmatpush.bf16.msrb.mxu1 %v1619_v5  ;;  %453 = vmatpush.bf16.msrb.mxu2 %v1592_v48 }
  0x4e   :  { %362 = vmatpush.bf16.msrb.mxu0 %v1616_v4  ;;  %468 = vmatpush.bf16.msrb.mxu3 %v1616_v4 }
  0x4f   :  { %375 = vmatpush.bf16.msrb.mxu1 %v1625_v9  ;;  %454 = vmatpush.bf16.msrb.mxu2 %v1602_v57 }
  0x52   :  { %474 = vmatpush.bf16.msra.mxu0 %v1559_v18 }
  0x53   :  { %554 = vmatpush.bf16.msra.mxu1 %v1548_v3  ;;  %455 = vmatpush.bf16.msrb.mxu2 %v1612_v2 }
  0x56   :  { %475 = vmatpush.bf16.msra.mxu0 %v1569_v26 }
  0x57   :  { %567 = vmatpush.bf16.msra.mxu2 %v1550_v7  ;;  %555 = vmatpush.bf16.msra.mxu1 %v1553_v10 }
  0x5a   :  { %476 = vmatpush.bf16.msra.mxu0 %v1579_v35 }
  0x5b   :  { %568 = vmatpush.bf16.msra.mxu2 %v1557_v11  ;;  %556 = vmatpush.bf16.msra.mxu1 %v1562_v19 }
  0x5e   :  { %477 = vmatpush.bf16.msra.mxu0 %v1589_v44 }
  0x5f   :  { %569 = vmatpush.bf16.msra.mxu2 %v1566_v22  ;;  %557 = vmatpush.bf16.msra.mxu1 %v1572_v30 }
  0x62   :  { %478 = vmatpush.bf16.msra.mxu0 %v1599_v53 }
  0x63   :  { %570 = vmatpush.bf16.msra.mxu2 %v1576_v31  ;;  %558 = vmatpush.bf16.msra.mxu1 %v1582_v39 }
  0x66   :  { %479 = vmatpush.bf16.msra.mxu0 %v1609_v62 }
  0x67   :  { %571 = vmatpush.bf16.msra.mxu2 %v1586_v41  ;;  %559 = vmatpush.bf16.msra.mxu1 %v1592_v48 }
  0x6a   :  { %480 = vmatpush.bf16.msra.mxu0 %v1619_v5 }
  0x6b   :  { %572 = vmatpush.bf16.msra.mxu2 %v1596_v49  ;;  %560 = vmatpush.bf16.msra.mxu1 %v1602_v57 }
  0x6e   :  { %481 = vmatpush.bf16.msra.mxu0 %v1625_v9 }
  0x6f   :  { %573 = vmatpush.bf16.msra.mxu2 %v1606_v58  ;;  %561 = vmatpush.bf16.msra.mxu1 %v1612_v2 }
  0x73   :  { %574 = vmatpush.bf16.msra.mxu2 %v1616_v4 }
  0xae   :  { %v245_v16 = vpop.f32.mrf.mxu0 }
  0xaf   :  { %v280_v17 = vadd.f32 %v277_v14, %v245_v16  ;;  %v1690_v16 = vld [vmem:[#allocation8] sm:$0xff] }
  0xb0   :  { %vm1222_vm8 = vcmp.gt.s32.totalorder %v1690_v16, 0 }
  0xb1   :  { %v258_v20 = vpop.f32.mrf.mxu1  ;;  %v1220_v23 = vmul.f32 -1.442695, %v280_v17 }
  0xb2   :  { %v300_v21 = vadd.f32 %v278_v15, %v258_v20 }
  0xb3   :  { %1288 = vpow2.f32 %v1220_v23 }
  0xb4   :  { %v1221_v24 = vmul.f32 -1.442695, %v300_v21 }
  0xb6   :  { %1290 = vpow2.f32 %v1221_v24  ;;  %v247_v25 = vpop.f32.mrf.mxu0  ;;  %v1504_v24 = vmov 0.0  }
  0xb7   :  { %v1223_v25 = vsel %vm1222_vm8, 1.0, %v1504_v24 }
  0xb9   :  { %v260_v27 = vpop.f32.mrf.mxu1  ;;  %v1289_v28 = vpop.eup %1288 }
  0xba   :  { %v284_v33 = vadd.f32 1.0, %v1289_v28 }
  0xbb   :  { %v271_v29 = vpop.f32.mrf.mxu2 }
  0xbc   :  { %v1291_v32 = vpop.eup %1290  ;;  %1292 = vrcp.f32 %v284_v33  ;;  %v296_v47 = vand.u32 2147483648, %v284_v33  ;;  %v294_v51 = vand.u32 2147483647, %v284_v33  ;;  %vm290_vm1 = vweird.f32 %v284_v33 }
  0xbd   :  { %v304_v34 = vadd.f32 1.0, %v1291_v32  ;;  %v323_v56 = vadd.f32 %v1687_v45, %v271_v29  ;;  %v382_v32 = vld [vmem:[#allocation3 + $0xc] sm:$0xff] }
  0xbe   :  { %v297_v59 = vor.u32 1.1754944e-38, %v296_v47  ;;  %vm295_vm3 = vcmp.eq.f32.partialorder %v294_v51, 8.507059e+37 }
  0xbf   :  { %1294 = vrcp.f32 %v304_v34  ;;  %vm310_vm4 = vweird.f32 %v304_v34  ;;  %v316_v1 = vand.u32 2147483648, %v304_v34  ;;  %v314_v8 = vand.u32 2147483647, %v304_v34 }
  0xc1   :  { %v317_v14 = vor.u32 1.1754944e-38, %v316_v1  ;;  %vm315_vm7 = vcmp.eq.f32.partialorder %v314_v8, 8.507059e+37 }
  0xc2   :  { %v1293_v37 = vpop.eup %1292 }
  0xc3   :  { %v273_v36 = vpop.f32.mrf.mxu2  ;;  %v286_v40 = vmul.f32 %v1293_v37, %v284_v33  ;;  %vm291_vm0 = vweird.f32 %v1293_v37  ;;  %v385_v33 = vunpack.c.h.bf16 %v382_v32 }
  0xc4   :  { %vm292_vm2 = vmor %vm290_vm1, %vm291_vm0  ;;  %vm1226_vm1 = vcmp.gt.s32.totalorder %v1690_v16, 1 }
  0xc5   :  { %v1295_v38 = vpop.eup %1294  ;;  %v287_v43 = vsub.f32 1.0, %v286_v40  ;;  %v384_v40 = vunpack.c.l.bf16 %v382_v32 }
  0xc6   :  { %v306_v42 = vmul.f32 %v1295_v38, %v304_v34  ;;  %vm311_vm5 = vweird.f32 %v1295_v38 }
  0xc7   :  { %v288_v50 = vmul.f32 %v1293_v37, %v287_v43  ;;  %vm312_vm6 = vmor %vm310_vm4, %vm311_vm5 }
  0xc8   :  { %v307_v46 = vsub.f32 1.0, %v306_v42 }
  0xc9   :  { %v289_v55 = vadd.f32 %v1293_v37, %v288_v50 }
  0xca   :  { %v308_v52 = vmul.f32 %v1295_v38, %v307_v46 }
  0xcb   :  { %v293_v61 = vsel %vm292_vm2, %v1293_v37, %v289_v55 }
  0xcc   :  { %v309_v63 = vadd.f32 %v1295_v38, %v308_v52  ;;  %v298_v0 = vsel %vm295_vm3, %v297_v59, %v293_v61 }
  0xcd   :  { %v324_v6 = vmul.f32 %v323_v56, %v298_v0 }
  0xce   :  { %v313_v13 = vsel %vm312_vm6, %v1295_v38, %v309_v63 }
  0xcf   :  { %v325_v12 = vadd.f32 %v324_v6, %v279_v60  ;;  %v318_v15 = vsel %vm315_vm7, %v317_v14, %v313_v13  ;;  %v383_v14 = vld [vmem:[#allocation3 + $0x14] sm:$0xf] }
  0xd0   :  { %v327_v17 = vsub.f32 1.0, %v318_v15  ;;  %v329_v23 = vmul.f32 0.0, %v318_v15 }
  0xd1   :  { %1296 = vtanh.f32 %v325_v12 }
  0xd7   :  { %v1297_v20 = vpop.eup %1296 }
  0xd8   :  { %v328_v21 = vmul.f32 %v1297_v20, %v327_v17 }
  0xda   :  { %v330_v27 = vadd.f32 %v329_v23, %v328_v21  ;;  %v386_v21 = vunpack.c.l.bf16 %v383_v14 }
  0xdc   :  { %v1694_v28 = vmul.f32 %v1223_v25, %v330_v27 }
  0xde   :  { %v339_v29 = vpack.c.bf16 %v1694_v28, %v1694_v28 }
  0xe0   :  { %340 = vst [vmem:[#allocation9] sm:$0xf] %v339_v29  ;;  %350 = vmatmul.bf16.vlgmr.msra.gmra.mxu3 %v339_v29  ;;  %363 = vmatmul.bf16.vlgmr.msrb.gmra.mxu0 %v339_v29 }
  0xe1   :  { %376 = vmatmul.bf16.vlgmr.msrb.gmra.mxu1 %v339_v29  ;;  %580 = vmatpush.bf16.msra.mxu3 %v1559_v18 }
  0xe2   :  { %660 = vmatpush.bf16.msrb.mxu0 %v1548_v3  ;;  %673 = vmatpush.bf16.msrb.mxu1 %v1550_v7 }
  0xe5   :  { %581 = vmatpush.bf16.msra.mxu3 %v1569_v26 }
  0xe6   :  { %661 = vmatpush.bf16.msrb.mxu0 %v1553_v10  ;;  %674 = vmatpush.bf16.msrb.mxu1 %v1557_v11 }
  0xe9   :  { %582 = vmatpush.bf16.msra.mxu3 %v1579_v35 }
  0xea   :  { %662 = vmatpush.bf16.msrb.mxu0 %v1562_v19  ;;  %675 = vmatpush.bf16.msrb.mxu1 %v1566_v22 }
  0xed   :  { %583 = vmatpush.bf16.msra.mxu3 %v1589_v44 }
  0xee   :  { %663 = vmatpush.bf16.msrb.mxu0 %v1572_v30  ;;  %676 = vmatpush.bf16.msrb.mxu1 %v1576_v31 }
  0xf1   :  { %584 = vmatpush.bf16.msra.mxu3 %v1599_v53 }
  0xf2   :  { %664 = vmatpush.bf16.msrb.mxu0 %v1582_v39  ;;  %677 = vmatpush.bf16.msrb.mxu1 %v1586_v41 }
  0xf5   :  { %585 = vmatpush.bf16.msra.mxu3 %v1609_v62 }
  0xf6   :  { %665 = vmatpush.bf16.msrb.mxu0 %v1592_v48  ;;  %678 = vmatpush.bf16.msrb.mxu1 %v1596_v49 }
  0xf9   :  { %586 = vmatpush.bf16.msra.mxu3 %v1619_v5 }
  0xfa   :  { %666 = vmatpush.bf16.msrb.mxu0 %v1602_v57  ;;  %679 = vmatpush.bf16.msrb.mxu1 %v1606_v58 }
  0xfd   :  { %587 = vmatpush.bf16.msra.mxu3 %v1625_v9 }
  0xfe   :  { %667 = vmatpush.bf16.msrb.mxu0 %v1612_v2  ;;  %680 = vmatpush.bf16.msrb.mxu1 %v1616_v4 }
 0x15d   :  { %v364_v34 = vpop.f32.mrf.mxu0 }
 0x15e   :  { %v407_v36 = vadd.f32 %v385_v33, %v364_v34  ;;  %v377_v37 = vpop.f32.mrf.mxu1 }
 0x15f   :  { %v427_v20 = vadd.f32 %v1687_v45, %v377_v37 }
 0x160   :  { %v1225_v38 = vmul.f32 -1.442695, %v407_v36 }
 0x162   :  { %1298 = vpow2.f32 %v1225_v38 }
 0x163   :  { %v351_v42 = vpop.f32.mrf.mxu3 }
 0x164   :  { %v387_v43 = vadd.f32 %v384_v40, %v351_v42 }
 0x165   :  { %v366_v46 = vpop.f32.mrf.mxu0 }
 0x166   :  { %v1224_v47 = vmul.f32 -1.442695, %v387_v43  ;;  %v379_v50 = vpop.f32.mrf.mxu1 }
 0x168   :  { %v1299_v51 = vpop.eup %1298  ;;  %1300 = vpow2.f32 %v1224_v47  ;;  %v1227_v47 = vsel %vm1226_vm1, 1.0, %v1504_v24 }
 0x169   :  { %v411_v52 = vadd.f32 1.0, %v1299_v51 }
 0x16b   :  { %v353_v54 = vpop.f32.mrf.mxu3  ;;  %1302 = vrcp.f32 %v411_v52  ;;  %v423_v29 = vand.u32 2147483648, %v411_v52  ;;  %vm417_vm14 = vweird.f32 %v411_v52  ;;  %v421_v33 = vand.u32 2147483647, %v411_v52 }
 0x16d   :  { %v424_v38 = vor.u32 1.1754944e-38, %v423_v29  ;;  %vm422_vm0 = vcmp.eq.f32.partialorder %v421_v33, 8.507059e+37 }
 0x16e   :  { %v1301_v55 = vpop.eup %1300 }
 0x16f   :  { %v391_v56 = vadd.f32 1.0, %v1301_v55 }
 0x171   :  { %1304 = vrcp.f32 %v391_v56  ;;  %v1303_v59 = vpop.eup %1302  ;;  %v403_v6 = vand.u32 2147483648, %v391_v56  ;;  %v401_v12 = vand.u32 2147483647, %v391_v56  ;;  %vm397_vm10 = vweird.f32 %v391_v56 }
 0x172   :  { %v413_v60 = vmul.f32 %v1303_v59, %v411_v52  ;;  %vm418_vm13 = vweird.f32 %v1303_v59 }
 0x173   :  { %v404_v17 = vor.u32 1.1754944e-38, %v403_v6  ;;  %vm402_vm12 = vcmp.eq.f32.partialorder %v401_v12, 8.507059e+37  ;;  %vm419_vm15 = vmor %vm417_vm14, %vm418_vm13 }
 0x174   :  { %v414_v0 = vsub.f32 1.0, %v413_v60 }
 0x176   :  { %v415_v13 = vmul.f32 %v1303_v59, %v414_v0 }
 0x177   :  { %v1305_v61 = vpop.eup %1304 }
 0x178   :  { %v393_v63 = vmul.f32 %v1305_v61, %v391_v56  ;;  %vm398_vm9 = vweird.f32 %v1305_v61  ;;  %v416_v25 = vadd.f32 %v1303_v59, %v415_v13 }
 0x179   :  { %vm399_vm11 = vmor %vm397_vm10, %vm398_vm9  ;;  %vm1230_vm10 = vcmp.gt.s32.totalorder %v1690_v16, 2 }
 0x17a   :  { %v394_v1 = vsub.f32 1.0, %v393_v63  ;;  %v420_v36 = vsel %vm419_vm15, %v1303_v59, %v416_v25 }
 0x17b   :  { %v425_v40 = vsel %vm422_vm0, %v424_v38, %v420_v36 }
 0x17c   :  { %v395_v8 = vmul.f32 %v1305_v61, %v394_v1  ;;  %v431_v42 = vsub.f32 1.0, %v425_v40  ;;  %v433_v43 = vmul.f32 %v425_v40, %v1694_v28 }
 0x17e   :  { %v396_v15 = vadd.f32 %v1305_v61, %v395_v8 }
 0x180   :  { %v400_v23 = vsel %vm399_vm11, %v1305_v61, %v396_v15 }
 0x181   :  { %v405_v27 = vsel %vm402_vm12, %v404_v17, %v400_v23 }
 0x182   :  { %v428_v32 = vmul.f32 %v427_v20, %v405_v27 }
 0x184   :  { %v429_v34 = vadd.f32 %v428_v32, %v386_v21 }
 0x186   :  { %1306 = vtanh.f32 %v429_v34 }
 0x18c   :  { %v1307_v37 = vpop.eup %1306 }
 0x18d   :  { %v432_v46 = vmul.f32 %v1307_v37, %v431_v42  ;;  %v489_v37 = vld [vmem:[#allocation3 + $0x20] sm:$0xf] }
 0x18f   :  { %v434_v50 = vadd.f32 %v433_v43, %v432_v46 }
 0x191   :  { %v440_v51 = vsub.f32 %v434_v50, %v1694_v28  ;;  %v443_v52 = vmul.f32 %v1227_v47, %v434_v50 }
 0x193   :  { %v441_v54 = vmul.f32 %v1227_v47, %v440_v51  ;;  %v444_v55 = vpack.c.bf16 %v443_v52, %v443_v52  ;;  %v492_v51 = vunpack.c.l.bf16 %v489_v37 }
 0x195   :  { %v1728_v56 = vadd.f32 %v441_v54, %v1694_v28  ;;  %446 = vst [vmem:[#allocation9 + $0x4] sm:$0xf] %v444_v55  ;;  %v488_v28 = vld [vmem:[#allocation3 + $0x18] sm:$0xff] }
 0x196   :  { %v490_v61 = vunpack.c.l.bf16 %v488_v28  ;;  %v491_v63 = vunpack.c.h.bf16 %v488_v28 }
 0x197   :  { %v447_v59 = vpack.c.bf16 %v1728_v56, %v1728_v56 }
 0x199   :  { %456 = vmatmul.bf16.vlgmr.msrb.gmra.mxu2 %v447_v59  ;;  %469 = vmatmul.bf16.vlgmr.msrb.gmra.mxu3 %v447_v59 }
 0x19a   :  { %482 = vmatmul.bf16.vlgmr.msra.gmra.mxu0 %v447_v59  ;;  %686 = vmatpush.bf16.msrb.mxu2 %v1559_v18 }
 0x19b   :  { %766 = vmatpush.bf16.msrb.mxu3 %v1548_v3  ;;  %779 = vmatpush.bf16.msra.mxu0 %v1550_v7 }
 0x19e   :  { %687 = vmatpush.bf16.msrb.mxu2 %v1569_v26 }
 0x19f   :  { %767 = vmatpush.bf16.msrb.mxu3 %v1553_v10  ;;  %780 = vmatpush.bf16.msra.mxu0 %v1557_v11 }
 0x1a2   :  { %688 = vmatpush.bf16.msrb.mxu2 %v1579_v35 }
 0x1a3   :  { %768 = vmatpush.bf16.msrb.mxu3 %v1562_v19  ;;  %781 = vmatpush.bf16.msra.mxu0 %v1566_v22 }
 0x1a6   :  { %689 = vmatpush.bf16.msrb.mxu2 %v1589_v44 }
 0x1a7   :  { %769 = vmatpush.bf16.msrb.mxu3 %v1572_v30  ;;  %782 = vmatpush.bf16.msra.mxu0 %v1576_v31 }
 0x1aa   :  { %690 = vmatpush.bf16.msrb.mxu2 %v1599_v53 }
 0x1ab   :  { %770 = vmatpush.bf16.msrb.mxu3 %v1582_v39  ;;  %783 = vmatpush.bf16.msra.mxu0 %v1586_v41 }
 0x1ae   :  { %691 = vmatpush.bf16.msrb.mxu2 %v1609_v62 }
 0x1af   :  { %771 = vmatpush.bf16.msrb.mxu3 %v1592_v48  ;;  %784 = vmatpush.bf16.msra.mxu0 %v1596_v49 }
 0x1b2   :  { %692 = vmatpush.bf16.msrb.mxu2 %v1619_v5 }
 0x1b3   :  { %772 = vmatpush.bf16.msrb.mxu3 %v1602_v57  ;;  %785 = vmatpush.bf16.msra.mxu0 %v1606_v58 }
 0x1b6   :  { %693 = vmatpush.bf16.msrb.mxu2 %v1625_v9 }
 0x1b7   :  { %773 = vmatpush.bf16.msrb.mxu3 %v1612_v2  ;;  %786 = vmatpush.bf16.msra.mxu0 %v1616_v4 }
 0x217   :  { %v483_v60 = vpop.f32.mrf.mxu0 }
 0x218   :  { %v533_v50 = vadd.f32 %v1687_v45, %v483_v60 }
 0x21c   :  { %v457_v0 = vpop.f32.mrf.mxu2  ;;  %v470_v1 = vpop.f32.mrf.mxu3 }
 0x21d   :  { %v493_v6 = vadd.f32 %v490_v61, %v457_v0  ;;  %v513_v8 = vadd.f32 %v491_v63, %v470_v1 }
 0x21f   :  { %v1228_v12 = vmul.f32 -1.442695, %v493_v6  ;;  %v1229_v13 = vmul.f32 -1.442695, %v513_v8  ;;  %v485_v14 = vpop.f32.mrf.mxu0 }
 0x220   :  { %v1231_v14 = vsel %vm1230_vm10, 1.0, %v1504_v24 }
 0x221   :  { %1308 = vpow2.f32 %v1228_v12 }
 0x222   :  { %1310 = vpow2.f32 %v1229_v13 }
 0x224   :  { %v459_v15 = vpop.f32.mrf.mxu2  ;;  %v472_v17 = vpop.f32.mrf.mxu3 }
 0x227   :  { %v1309_v20 = vpop.eup %1308 }
 0x228   :  { %v1311_v21 = vpop.eup %1310  ;;  %v497_v23 = vadd.f32 1.0, %v1309_v20 }
 0x229   :  { %v517_v25 = vadd.f32 1.0, %v1311_v21 }
 0x22a   :  { %1312 = vrcp.f32 %v497_v23  ;;  %v509_v36 = vand.u32 2147483648, %v497_v23  ;;  %v507_v42 = vand.u32 2147483647, %v497_v23  ;;  %vm503_vm3 = vweird.f32 %v497_v23 }
 0x22b   :  { %1314 = vrcp.f32 %v517_v25  ;;  %v529_v28 = vand.u32 2147483648, %v517_v25  ;;  %vm523_vm7 = vweird.f32 %v517_v25  ;;  %v527_v61 = vand.u32 2147483647, %v517_v25 }
 0x22c   :  { %v510_v47 = vor.u32 1.1754944e-38, %v509_v36  ;;  %vm508_vm5 = vcmp.eq.f32.partialorder %v507_v42, 8.507059e+37 }
 0x22d   :  { %v530_v1 = vor.u32 1.1754944e-38, %v529_v28  ;;  %vm528_vm9 = vcmp.eq.f32.partialorder %v527_v61, 8.507059e+37 }
 0x230   :  { %v1313_v27 = vpop.eup %1312 }
 0x231   :  { %v1315_v29 = vpop.eup %1314  ;;  %v499_v32 = vmul.f32 %v1313_v27, %v497_v23  ;;  %vm504_vm2 = vweird.f32 %v1313_v27 }
 0x232   :  { %v519_v33 = vmul.f32 %v1315_v29, %v517_v25  ;;  %vm505_vm4 = vmor %vm503_vm3, %vm504_vm2  ;;  %vm524_vm6 = vweird.f32 %v1315_v29  ;;  %vm1234_vm3 = vcmp.gt.s32.totalorder %v1690_v16, 3 }
 0x233   :  { %v500_v34 = vsub.f32 1.0, %v499_v32  ;;  %vm525_vm8 = vmor %vm523_vm7, %vm524_vm6 }
 0x234   :  { %v520_v38 = vsub.f32 1.0, %v519_v33 }
 0x235   :  { %v501_v40 = vmul.f32 %v1313_v27, %v500_v34 }
 0x236   :  { %v521_v43 = vmul.f32 %v1315_v29, %v520_v38 }
 0x237   :  { %v502_v46 = vadd.f32 %v1313_v27, %v501_v40 }
 0x238   :  { %v522_v55 = vadd.f32 %v1315_v29, %v521_v43 }
 0x239   :  { %v506_v52 = vsel %vm505_vm4, %v1313_v27, %v502_v46 }
 0x23a   :  { %v511_v54 = vsel %vm508_vm5, %v510_v47, %v506_v52  ;;  %v526_v0 = vsel %vm525_vm8, %v1315_v29, %v522_v55 }
 0x23b   :  { %v534_v59 = vmul.f32 %v533_v50, %v511_v54  ;;  %v531_v6 = vsel %vm528_vm9, %v530_v1, %v526_v0 }
 0x23c   :  { %v537_v8 = vsub.f32 1.0, %v531_v6  ;;  %v539_v13 = vmul.f32 %v531_v6, %v1728_v56 }
 0x23d   :  { %v535_v63 = vadd.f32 %v534_v59, %v492_v51 }
 0x23f   :  { %1316 = vtanh.f32 %v535_v63  ;;  %v595_v63 = vld [vmem:[#allocation3 + $0x2c] sm:$0xf] }
 0x245   :  { %v1317_v60 = vpop.eup %1316 }
 0x246   :  { %v538_v12 = vmul.f32 %v1317_v60, %v537_v8 }
 0x248   :  { %v540_v15 = vadd.f32 %v539_v13, %v538_v12  ;;  %v598_v12 = vunpack.c.l.bf16 %v595_v63 }
 0x24a   :  { %v546_v17 = vsub.f32 %v540_v15, %v1728_v56  ;;  %v549_v20 = vmul.f32 %v1231_v14, %v540_v15 }
 0x24c   :  { %v547_v21 = vmul.f32 %v1231_v14, %v546_v17  ;;  %v550_v23 = vpack.c.bf16 %v549_v20, %v549_v20 }
 0x24e   :  { %v1762_v25 = vadd.f32 %v547_v21, %v1728_v56  ;;  %552 = vst [vmem:[#allocation9 + $0x8] sm:$0xf] %v550_v23  ;;  %v594_v56 = vld [vmem:[#allocation3 + $0x24] sm:$0xff] }
 0x24f   :  { %v596_v29 = vunpack.c.l.bf16 %v594_v56  ;;  %v597_v36 = vunpack.c.h.bf16 %v594_v56 }
 0x250   :  { %v553_v27 = vpack.c.bf16 %v1762_v25, %v1762_v25 }
 0x252   :  { %562 = vmatmul.bf16.vlgmr.msra.gmra.mxu1 %v553_v27  ;;  %575 = vmatmul.bf16.vlgmr.msra.gmra.mxu2 %v553_v27 }
 0x253   :  { %588 = vmatmul.bf16.vlgmr.msra.gmra.mxu3 %v553_v27  ;;  %792 = vmatpush.bf16.msra.mxu1 %v1559_v18 }
 0x254   :  { %872 = vmatpush.bf16.msra.mxu2 %v1548_v3  ;;  %885 = vmatpush.bf16.msra.mxu3 %v1550_v7 }
 0x257   :  { %793 = vmatpush.bf16.msra.mxu1 %v1569_v26 }
 0x258   :  { %873 = vmatpush.bf16.msra.mxu2 %v1553_v10  ;;  %886 = vmatpush.bf16.msra.mxu3 %v1557_v11 }
 0x25b   :  { %794 = vmatpush.bf16.msra.mxu1 %v1579_v35 }
 0x25c   :  { %874 = vmatpush.bf16.msra.mxu2 %v1562_v19  ;;  %887 = vmatpush.bf16.msra.mxu3 %v1566_v22 }
 0x25f   :  { %795 = vmatpush.bf16.msra.mxu1 %v1589_v44 }
 0x260   :  { %875 = vmatpush.bf16.msra.mxu2 %v1572_v30  ;;  %888 = vmatpush.bf16.msra.mxu3 %v1576_v31 }
 0x263   :  { %796 = vmatpush.bf16.msra.mxu1 %v1599_v53 }
 0x264   :  { %876 = vmatpush.bf16.msra.mxu2 %v1582_v39  ;;  %889 = vmatpush.bf16.msra.mxu3 %v1586_v41 }
 0x267   :  { %797 = vmatpush.bf16.msra.mxu1 %v1609_v62 }
 0x268   :  { %877 = vmatpush.bf16.msra.mxu2 %v1592_v48  ;;  %890 = vmatpush.bf16.msra.mxu3 %v1596_v49 }
 0x26b   :  { %798 = vmatpush.bf16.msra.mxu1 %v1619_v5 }
 0x26c   :  { %878 = vmatpush.bf16.msra.mxu2 %v1602_v57  ;;  %891 = vmatpush.bf16.msra.mxu3 %v1606_v58 }
 0x26f   :  { %799 = vmatpush.bf16.msra.mxu1 %v1625_v9 }
 0x270   :  { %879 = vmatpush.bf16.msra.mxu2 %v1612_v2  ;;  %892 = vmatpush.bf16.msra.mxu3 %v1616_v4 }
 0x2cf   :  { %v563_v32 = vpop.f32.mrf.mxu1 }
 0x2d0   :  { %v599_v33 = vadd.f32 %v596_v29, %v563_v32 }
 0x2d2   :  { %v1232_v34 = vmul.f32 -1.442695, %v599_v33 }
 0x2d4   :  { %1318 = vpow2.f32 %v1232_v34 }
 0x2d5   :  { %v576_v38 = vpop.f32.mrf.mxu2 }
 0x2d6   :  { %v619_v40 = vadd.f32 %v597_v36, %v576_v38  ;;  %v589_v42 = vpop.f32.mrf.mxu3 }
 0x2d7   :  { %v565_v37 = vpop.f32.mrf.mxu1  ;;  %v639_v17 = vadd.f32 %v1687_v45, %v589_v42 }
 0x2d8   :  { %v1233_v43 = vmul.f32 -1.442695, %v619_v40 }
 0x2da   :  { %v1319_v46 = vpop.eup %1318  ;;  %1320 = vpow2.f32 %v1233_v43  ;;  %v1235_v43 = vsel %vm1234_vm3, 1.0, %v1504_v24 }
 0x2db   :  { %v603_v47 = vadd.f32 1.0, %v1319_v46 }
 0x2dd   :  { %1322 = vrcp.f32 %v603_v47  ;;  %v578_v50 = vpop.f32.mrf.mxu2  ;;  %v615_v61 = vand.u32 2147483648, %v603_v47  ;;  %v613_v1 = vand.u32 2147483647, %v603_v47  ;;  %vm609_vm12 = vweird.f32 %v603_v47 }
 0x2de   :  { %v591_v51 = vpop.f32.mrf.mxu3 }
 0x2df   :  { %v616_v13 = vor.u32 1.1754944e-38, %v615_v61  ;;  %vm614_vm14 = vcmp.eq.f32.partialorder %v613_v1, 8.507059e+37 }
 0x2e0   :  { %v1321_v52 = vpop.eup %1320 }
 0x2e1   :  { %v623_v54 = vadd.f32 1.0, %v1321_v52 }
 0x2e3   :  { %v1323_v55 = vpop.eup %1322  ;;  %1324 = vrcp.f32 %v623_v54  ;;  %v635_v23 = vand.u32 2147483648, %v623_v54  ;;  %v633_v56 = vand.u32 2147483647, %v623_v54  ;;  %vm629_vm0 = vweird.f32 %v623_v54 }
 0x2e4   :  { %v605_v59 = vmul.f32 %v1323_v55, %v603_v47  ;;  %vm610_vm11 = vweird.f32 %v1323_v55 }
 0x2e5   :  { %vm611_vm13 = vmor %vm609_vm12, %vm610_vm11  ;;  %v636_v33 = vor.u32 1.1754944e-38, %v635_v23  ;;  %vm634_vm2 = vcmp.eq.f32.partialorder %v633_v56, 8.507059e+37  ;;  %vm1238_vm12 = vcmp.gt.s32.totalorder %v1690_v16, 4 }
 0x2e6   :  { %v606_v28 = vsub.f32 1.0, %v605_v59 }
 0x2e8   :  { %v607_v0 = vmul.f32 %v1323_v55, %v606_v28 }
 0x2e9   :  { %v1325_v6 = vpop.eup %1324 }
 0x2ea   :  { %v625_v8 = vmul.f32 %v1325_v6, %v623_v54  ;;  %v608_v60 = vadd.f32 %v1323_v55, %v607_v0  ;;  %vm630_vm15 = vweird.f32 %v1325_v6 }
 0x2eb   :  { %vm631_vm1 = vmor %vm629_vm0, %vm630_vm15 }
 0x2ec   :  { %v626_v14 = vsub.f32 1.0, %v625_v8  ;;  %v612_v15 = vsel %vm611_vm13, %v1323_v55, %v608_v60 }
 0x2ed   :  { %v617_v20 = vsel %vm614_vm14, %v616_v13, %v612_v15  ;;  %v701_v13 = vld [vmem:[#allocation3 + $0x38] sm:$0xf] }
 0x2ee   :  { %v627_v21 = vmul.f32 %v1325_v6, %v626_v14  ;;  %v640_v27 = vmul.f32 %v639_v17, %v617_v20  ;;  %v704_v17 = vunpack.c.l.bf16 %v701_v13 }
 0x2f0   :  { %v628_v29 = vadd.f32 %v1325_v6, %v627_v21  ;;  %v641_v32 = vadd.f32 %v640_v27, %v598_v12 }
 0x2f2   :  { %v632_v34 = vsel %vm631_vm1, %v1325_v6, %v628_v29  ;;  %1326 = vtanh.f32 %v641_v32 }
 0x2f3   :  { %v637_v36 = vsel %vm634_vm2, %v636_v33, %v632_v34 }
 0x2f4   :  { %v643_v38 = vsub.f32 1.0, %v637_v36  ;;  %v645_v37 = vmul.f32 %v637_v36, %v1762_v25 }
 0x2f8   :  { %v1327_v40 = vpop.eup %1326 }
 0x2f9   :  { %v644_v42 = vmul.f32 %v1327_v40, %v643_v38 }
 0x2fb   :  { %v646_v46 = vadd.f32 %v645_v37, %v644_v42 }
 0x2fd   :  { %v652_v47 = vsub.f32 %v646_v46, %v1762_v25  ;;  %v655_v50 = vmul.f32 %v1235_v43, %v646_v46  ;;  %v1239_v46 = vsel %vm1238_vm12, 1.0, %v1504_v24 }
 0x2ff   :  { %v656_v51 = vpack.c.bf16 %v655_v50, %v655_v50  ;;  %v653_v52 = vmul.f32 %v1235_v43, %v652_v47 }
 0x301   :  { %658 = vst [vmem:[#allocation9 + $0xc] sm:$0xf] %v656_v51  ;;  %v1796_v54 = vadd.f32 %v653_v52, %v1762_v25 }
 0x303   :  { %v659_v55 = vpack.c.bf16 %v1796_v54, %v1796_v54 }
 0x305   :  { %668 = vmatmul.bf16.vlgmr.msrb.gmra.mxu0 %v659_v55  ;;  %681 = vmatmul.bf16.vlgmr.msrb.gmra.mxu1 %v659_v55 }
 0x306   :  { %694 = vmatmul.bf16.vlgmr.msrb.gmra.mxu2 %v659_v55  ;;  %898 = vmatpush.bf16.msrb.mxu0 %v1559_v18 }
 0x307   :  { %978 = vmatpush.bf16.msrb.mxu1 %v1548_v3  ;;  %991 = vmatpush.bf16.msrb.mxu2 %v1550_v7  ;;  %v700_v3 = vld [vmem:[#allocation3 + $0x30] sm:$0xff] }
 0x308   :  { %v702_v7 = vunpack.c.l.bf16 %v700_v3 }
 0x30a   :  { %899 = vmatpush.bf16.msrb.mxu0 %v1569_v26 }
 0x30b   :  { %979 = vmatpush.bf16.msrb.mxu1 %v1553_v10  ;;  %992 = vmatpush.bf16.msrb.mxu2 %v1557_v11  ;;  %v703_v10 = vunpack.c.h.bf16 %v700_v3 }
 0x30e   :  { %900 = vmatpush.bf16.msrb.mxu0 %v1579_v35 }
 0x30f   :  { %980 = vmatpush.bf16.msrb.mxu1 %v1562_v19  ;;  %993 = vmatpush.bf16.msrb.mxu2 %v1566_v22 }
 0x312   :  { %901 = vmatpush.bf16.msrb.mxu0 %v1589_v44 }
 0x313   :  { %981 = vmatpush.bf16.msrb.mxu1 %v1572_v30  ;;  %994 = vmatpush.bf16.msrb.mxu2 %v1576_v31 }
 0x316   :  { %902 = vmatpush.bf16.msrb.mxu0 %v1599_v53 }
 0x317   :  { %982 = vmatpush.bf16.msrb.mxu1 %v1582_v39  ;;  %995 = vmatpush.bf16.msrb.mxu2 %v1586_v41 }
 0x31a   :  { %903 = vmatpush.bf16.msrb.mxu0 %v1609_v62 }
 0x31b   :  { %983 = vmatpush.bf16.msrb.mxu1 %v1592_v48  ;;  %996 = vmatpush.bf16.msrb.mxu2 %v1596_v49 }
 0x31e   :  { %904 = vmatpush.bf16.msrb.mxu0 %v1619_v5 }
 0x31f   :  { %984 = vmatpush.bf16.msrb.mxu1 %v1602_v57  ;;  %997 = vmatpush.bf16.msrb.mxu2 %v1606_v58 }
 0x322   :  { %905 = vmatpush.bf16.msrb.mxu0 %v1625_v9 }
 0x323   :  { %985 = vmatpush.bf16.msrb.mxu1 %v1612_v2  ;;  %998 = vmatpush.bf16.msrb.mxu2 %v1616_v4 }
 0x382   :  { %v669_v11 = vpop.f32.mrf.mxu0  ;;  %v682_v19 = vpop.f32.mrf.mxu1 }
 0x383   :  { %v705_v22 = vadd.f32 %v702_v7, %v669_v11  ;;  %v725_v30 = vadd.f32 %v703_v10, %v682_v19 }
 0x385   :  { %v1236_v31 = vmul.f32 -1.442695, %v705_v22  ;;  %v1237_v39 = vmul.f32 -1.442695, %v725_v30 }
 0x387   :  { %1328 = vpow2.f32 %v1236_v31 }
 0x388   :  { %1330 = vpow2.f32 %v1237_v39 }
 0x389   :  { %v695_v41 = vpop.f32.mrf.mxu2 }
 0x38a   :  { %v671_v48 = vpop.f32.mrf.mxu0  ;;  %v684_v49 = vpop.f32.mrf.mxu1  ;;  %v745_v21 = vadd.f32 %v1687_v45, %v695_v41 }
 0x38d   :  { %v1329_v57 = vpop.eup %1328 }
 0x38e   :  { %v1331_v58 = vpop.eup %1330  ;;  %v709_v25 = vadd.f32 1.0, %v1329_v57 }
 0x38f   :  { %v729_v2 = vadd.f32 1.0, %v1331_v58 }
 0x390   :  { %1332 = vrcp.f32 %v709_v25  ;;  %v721_v6 = vand.u32 2147483648, %v709_v25  ;;  %v719_v60 = vand.u32 2147483647, %v709_v25  ;;  %vm715_vm5 = vweird.f32 %v709_v25 }
 0x391   :  { %1334 = vrcp.f32 %v729_v2  ;;  %v697_v4 = vpop.f32.mrf.mxu2  ;;  %v741_v56 = vand.u32 2147483648, %v729_v2  ;;  %vm735_vm9 = vweird.f32 %v729_v2  ;;  %v739_v32 = vand.u32 2147483647, %v729_v2 }
 0x392   :  { %v722_v15 = vor.u32 1.1754944e-38, %v721_v6  ;;  %vm720_vm7 = vcmp.eq.f32.partialorder %v719_v60, 8.507059e+37 }
 0x393   :  { %v742_v36 = vor.u32 1.1754944e-38, %v741_v56  ;;  %vm740_vm11 = vcmp.eq.f32.partialorder %v739_v32, 8.507059e+37 }
 0x396   :  { %v1333_v59 = vpop.eup %1332 }
 0x397   :  { %v1335_v28 = vpop.eup %1334  ;;  %v711_v61 = vmul.f32 %v1333_v59, %v709_v25  ;;  %vm716_vm4 = vweird.f32 %v1333_v59 }
 0x398   :  { %v731_v63 = vmul.f32 %v1335_v28, %v729_v2  ;;  %vm717_vm6 = vmor %vm715_vm5, %vm716_vm4  ;;  %vm736_vm8 = vweird.f32 %v1335_v28  ;;  %vm1242_vm5 = vcmp.gt.s32.totalorder %v1690_v16, 5  ;;  %v912_v16 = vld [vmem:[#allocation3 + $0x48] sm:$0xff] }
 0x399   :  { %v712_v0 = vsub.f32 1.0, %v711_v61  ;;  %vm737_vm10 = vmor %vm735_vm9, %vm736_vm8 }
 0x39a   :  { %v732_v1 = vsub.f32 1.0, %v731_v63  ;;  %v807_v63 = vld [vmem:[#allocation3 + $0x44] sm:$0xf] }
 0x39b   :  { %v713_v8 = vmul.f32 %v1333_v59, %v712_v0 }
 0x39c   :  { %v733_v12 = vmul.f32 %v1335_v28, %v732_v1 }
 0x39d   :  { %v714_v14 = vadd.f32 %v1333_v59, %v713_v8  ;;  %v810_v8 = vunpack.c.l.bf16 %v807_v63 }
 0x39e   :  { %v734_v23 = vadd.f32 %v1335_v28, %v733_v12 }
 0x39f   :  { %v718_v20 = vsel %vm717_vm6, %v1333_v59, %v714_v14 }
 0x3a0   :  { %v723_v27 = vsel %vm720_vm7, %v722_v15, %v718_v20  ;;  %v738_v34 = vsel %vm737_vm10, %v1335_v28, %v734_v23 }
 0x3a1   :  { %v746_v29 = vmul.f32 %v745_v21, %v723_v27  ;;  %v743_v38 = vsel %vm740_vm11, %v742_v36, %v738_v34 }
 0x3a2   :  { %v749_v40 = vsub.f32 1.0, %v743_v38  ;;  %v751_v43 = vmul.f32 %v743_v38, %v1796_v54 }
 0x3a3   :  { %v747_v33 = vadd.f32 %v746_v29, %v704_v17 }
 0x3a5   :  { %1336 = vtanh.f32 %v747_v33  ;;  %v1243_v33 = vsel %vm1242_vm5, 1.0, %v1504_v24 }
 0x3ab   :  { %v1337_v42 = vpop.eup %1336 }
 0x3ac   :  { %v750_v37 = vmul.f32 %v1337_v42, %v749_v40 }
 0x3ae   :  { %v752_v47 = vadd.f32 %v751_v43, %v750_v37 }
 0x3b0   :  { %v758_v50 = vsub.f32 %v752_v47, %v1796_v54  ;;  %v761_v51 = vmul.f32 %v1239_v46, %v752_v47  ;;  %v914_v47 = vunpack.c.l.bf16 %v912_v16 }
 0x3b2   :  { %v762_v52 = vpack.c.bf16 %v761_v51, %v761_v51  ;;  %v759_v55 = vmul.f32 %v1239_v46, %v758_v50  ;;  %v915_v50 = vunpack.c.h.bf16 %v912_v16 }
 0x3b4   :  { %764 = vst [vmem:[#allocation9 + $0x10] sm:$0xf] %v762_v52  ;;  %v1830_v3 = vadd.f32 %v759_v55, %v1796_v54  ;;  %v806_v54 = vld [vmem:[#allocation3 + $0x3c] sm:$0xff] }
 0x3b5   :  { %v809_v10 = vunpack.c.h.bf16 %v806_v54  ;;  %v808_v30 = vunpack.c.l.bf16 %v806_v54 }
 0x3b6   :  { %v765_v7 = vpack.c.bf16 %v1830_v3, %v1830_v3 }
 0x3b8   :  { %774 = vmatmul.bf16.vlgmr.msrb.gmra.mxu3 %v765_v7  ;;  %787 = vmatmul.bf16.vlgmr.msra.gmra.mxu0 %v765_v7 }
 0x3b9   :  { %800 = vmatmul.bf16.vlgmr.msra.gmra.mxu1 %v765_v7  ;;  %1004 = vmatpush.bf16.msrb.mxu3 %v1559_v18 }
 0x3bd   :  { %1005 = vmatpush.bf16.msrb.mxu3 %v1569_v26 }
 0x3c1   :  { %1006 = vmatpush.bf16.msrb.mxu3 %v1579_v35 }
 0x3c5   :  { %1007 = vmatpush.bf16.msrb.mxu3 %v1589_v44 }
 0x3c9   :  { %1008 = vmatpush.bf16.msrb.mxu3 %v1599_v53 }
 0x3cd   :  { %1009 = vmatpush.bf16.msrb.mxu3 %v1609_v62 }
 0x3d1   :  { %1010 = vmatpush.bf16.msrb.mxu3 %v1619_v5 }
 0x3d5   :  { %1011 = vmatpush.bf16.msrb.mxu3 %v1625_v9 }
 0x435   :  { %v788_v11 = vpop.f32.mrf.mxu0 }
 0x436   :  { %v831_v19 = vadd.f32 %v809_v10, %v788_v11  ;;  %v801_v22 = vpop.f32.mrf.mxu1 }
 0x437   :  { %v851_v6 = vadd.f32 %v1687_v45, %v801_v22 }
 0x438   :  { %v1241_v18 = vmul.f32 -1.442695, %v831_v19 }
 0x43a   :  { %1338 = vpow2.f32 %v1241_v18 }
 0x43b   :  { %v775_v26 = vpop.f32.mrf.mxu3 }
 0x43c   :  { %v811_v35 = vadd.f32 %v808_v30, %v775_v26 }
 0x43d   :  { %v790_v31 = vpop.f32.mrf.mxu0 }
 0x43e   :  { %v1240_v44 = vmul.f32 -1.442695, %v811_v35  ;;  %v803_v39 = vpop.f32.mrf.mxu1 }
 0x440   :  { %v1339_v53 = vpop.eup %1338  ;;  %1340 = vpow2.f32 %v1240_v44 }
 0x441   :  { %v835_v62 = vadd.f32 1.0, %v1339_v53 }
 0x443   :  { %v777_v41 = vpop.f32.mrf.mxu3  ;;  %1342 = vrcp.f32 %v835_v62  ;;  %v847_v14 = vand.u32 2147483648, %v835_v62  ;;  %vm841_vm2 = vweird.f32 %v835_v62  ;;  %v845_v17 = vand.u32 2147483647, %v835_v62 }
 0x445   :  { %v848_v23 = vor.u32 1.1754944e-38, %v847_v14  ;;  %vm846_vm4 = vcmp.eq.f32.partialorder %v845_v17, 8.507059e+37  ;;  %v1858_v14 = vld [vmem:[#allocation8] sm:$0xff] }
 0x446   :  { %v1341_v5 = vpop.eup %1340 }
 0x447   :  { %v815_v9 = vadd.f32 1.0, %v1341_v5 }
 0x449   :  { %1344 = vrcp.f32 %v815_v9  ;;  %v1343_v48 = vpop.eup %1342  ;;  %v827_v4 = vand.u32 2147483648, %v815_v9  ;;  %v825_v28 = vand.u32 2147483647, %v815_v9  ;;  %vm821_vm14 = vweird.f32 %v815_v9 }
 0x44a   :  { %v837_v49 = vmul.f32 %v1343_v48, %v835_v62  ;;  %vm842_vm1 = vweird.f32 %v1343_v48 }
 0x44b   :  { %v828_v1 = vor.u32 1.1754944e-38, %v827_v4  ;;  %vm826_vm0 = vcmp.eq.f32.partialorder %v825_v28, 8.507059e+37  ;;  %vm843_vm3 = vmor %vm841_vm2, %vm842_vm1 }
 0x44c   :  { %v838_v25 = vsub.f32 1.0, %v837_v49 }
 0x44e   :  { %v839_v61 = vmul.f32 %v1343_v48, %v838_v25  ;;  %v1855_v25 = vld [vmem:[%s1883_s2] ss:$0 sm:$0xff]  ;;  %s1505_s2 = smov [#allocation9]  }
 0x44f   :  { %v1345_v57 = vpop.eup %1344  ;;  %s1092_s11 = sshll.u32 %s1505_s2, 4  ;;  %s1093_s11 = int_to_ptr.vmem [resolvable:$true] %s1092_s11 }
 0x450   :  { %v817_v58 = vmul.f32 %v1345_v57, %v815_v9  ;;  %vm822_vm13 = vweird.f32 %v1345_v57  ;;  %v840_v12 = vadd.f32 %v1343_v48, %v839_v61 }
 0x451   :  { %vm823_vm15 = vmor %vm821_vm14, %vm822_vm13  ;;  %vm1246_vm14 = vcmp.gt.s32.totalorder %v1858_v14, 6 }
 0x452   :  { %v818_v2 = vsub.f32 1.0, %v817_v58  ;;  %v844_v21 = vsel %vm843_vm3, %v1343_v48, %v840_v12  ;;  %v913_v48 = vld [vmem:[#allocation3 + $0x50] sm:$0xf] }
 0x453   :  { %v849_v27 = vsel %vm846_vm4, %v848_v23, %v844_v21  ;;  %v916_v4 = vunpack.c.l.bf16 %v913_v48  ;;  %v1247_v21 = vsel %vm1246_vm14, 1.0, %v1504_v24 }
 0x454   :  { %v819_v59 = vmul.f32 %v1345_v57, %v818_v2  ;;  %v855_v56 = vsub.f32 1.0, %v849_v27  ;;  %v857_v29 = vmul.f32 %v849_v27, %v1830_v3 }
 0x456   :  { %v820_v0 = vadd.f32 %v1345_v57, %v819_v59 }
 0x458   :  { %v824_v60 = vsel %vm823_vm15, %v1345_v57, %v820_v0 }
 0x459   :  { %v829_v13 = vsel %vm826_vm0, %v828_v1, %v824_v60 }
 0x45a   :  { %v852_v15 = vmul.f32 %v851_v6, %v829_v13 }
 0x45c   :  { %v853_v20 = vadd.f32 %v852_v15, %v810_v8 }
 0x45e   :  { %1346 = vtanh.f32 %v853_v20 }
 0x464   :  { %v1347_v45 = vpop.eup %1346 }
 0x465   :  { %v856_v32 = vmul.f32 %v1347_v45, %v855_v56 }
 0x467   :  { %v858_v34 = vadd.f32 %v857_v29, %v856_v32 }
 0x469   :  { %v864_v36 = vsub.f32 %v858_v34, %v1830_v3  ;;  %v867_v38 = vmul.f32 %v1243_v33, %v858_v34  ;;  %v1018_v34 = vld [vmem:[#allocation3 + $0x54] sm:$0xff] }
 0x46b   :  { %v865_v40 = vmul.f32 %v1243_v33, %v864_v36  ;;  %v868_v42 = vpack.c.bf16 %v867_v38, %v867_v38  ;;  %v1020_v36 = vunpack.c.l.bf16 %v1018_v34 }
 0x46d   :  { %v1848_v37 = vadd.f32 %v865_v40, %v1830_v3  ;;  %870 = vst [vmem:[#allocation9 + $0x14] sm:$0xf] %v868_v42 }
 0x46f   :  { %v871_v43 = vpack.c.bf16 %v1848_v37, %v1848_v37 }
 0x471   :  { %880 = vmatmul.bf16.vlgmr.msra.gmra.mxu2 %v871_v43  ;;  %893 = vmatmul.bf16.vlgmr.msra.gmra.mxu3 %v871_v43 }
 0x472   :  { %906 = vmatmul.bf16.vlgmr.msrb.gmra.mxu0 %v871_v43  ;;  %v1021_v43 = vunpack.c.h.bf16 %v1018_v34 }
 0x4ef   :  { %v907_v46 = vpop.f32.mrf.mxu0 }
 0x4f0   :  { %v957_v2 = vadd.f32 %v1855_v25, %v907_v46 }
 0x4f4   :  { %v881_v51 = vpop.f32.mrf.mxu2  ;;  %v894_v52 = vpop.f32.mrf.mxu3 }
 0x4f5   :  { %v917_v55 = vadd.f32 %v914_v47, %v881_v51  ;;  %v937_v7 = vadd.f32 %v915_v50, %v894_v52 }
 0x4f7   :  { %v1244_v54 = vmul.f32 -1.442695, %v917_v55  ;;  %v1245_v10 = vmul.f32 -1.442695, %v937_v7  ;;  %v909_v11 = vpop.f32.mrf.mxu0 }
 0x4f9   :  { %1348 = vpow2.f32 %v1244_v54 }
 0x4fa   :  { %1350 = vpow2.f32 %v1245_v10 }
 0x4fc   :  { %v883_v3 = vpop.f32.mrf.mxu2  ;;  %v896_v19 = vpop.f32.mrf.mxu3 }
 0x4ff   :  { %v1349_v22 = vpop.eup %1348 }
 0x500   :  { %v1351_v18 = vpop.eup %1350  ;;  %v921_v30 = vadd.f32 1.0, %v1349_v22 }
 0x501   :  { %v941_v26 = vadd.f32 1.0, %v1351_v18  ;;  %v1019_v18 = vld [vmem:[#allocation3 + $0x5c] sm:$0xf] }
 0x502   :  { %1352 = vrcp.f32 %v921_v30  ;;  %v933_v62 = vand.u32 2147483648, %v921_v30  ;;  %v931_v9 = vand.u32 2147483647, %v921_v30  ;;  %vm927_vm7 = vweird.f32 %v921_v30 }
 0x503   :  { %1354 = vrcp.f32 %v941_v26  ;;  %v953_v0 = vand.u32 2147483648, %v941_v26  ;;  %vm947_vm11 = vweird.f32 %v941_v26  ;;  %v951_v1 = vand.u32 2147483647, %v941_v26 }
 0x504   :  { %v934_v58 = vor.u32 1.1754944e-38, %v933_v62  ;;  %vm932_vm9 = vcmp.eq.f32.partialorder %v931_v9, 8.507059e+37 }
 0x505   :  { %v954_v60 = vor.u32 1.1754944e-38, %v953_v0  ;;  %vm952_vm13 = vcmp.eq.f32.partialorder %v951_v1, 8.507059e+37 }
 0x508   :  { %v1353_v35 = vpop.eup %1352 }
 0x509   :  { %v1355_v31 = vpop.eup %1354  ;;  %v923_v44 = vmul.f32 %v1353_v35, %v921_v30  ;;  %vm928_vm6 = vweird.f32 %v1353_v35 }
 0x50a   :  { %v943_v39 = vmul.f32 %v1355_v31, %v941_v26  ;;  %vm929_vm8 = vmor %vm927_vm7, %vm928_vm6  ;;  %vm948_vm10 = vweird.f32 %v1355_v31  ;;  %vm1250_vm7 = vcmp.gt.s32.totalorder %v1858_v14, 7 }
 0x50b   :  { %v924_v53 = vsub.f32 1.0, %v923_v44  ;;  %vm949_vm12 = vmor %vm947_vm11, %vm948_vm10 }
 0x50c   :  { %v944_v41 = vsub.f32 1.0, %v943_v39  ;;  %v1022_v39 = vunpack.c.l.bf16 %v1019_v18 }
 0x50d   :  { %v925_v5 = vmul.f32 %v1353_v35, %v924_v53 }
 0x50e   :  { %v945_v49 = vmul.f32 %v1355_v31, %v944_v41 }
 0x50f   :  { %v926_v57 = vadd.f32 %v1353_v35, %v925_v5 }
 0x510   :  { %v946_v61 = vadd.f32 %v1355_v31, %v945_v49 }
 0x511   :  { %v930_v59 = vsel %vm929_vm8, %v1353_v35, %v926_v57 }
 0x512   :  { %v935_v28 = vsel %vm932_vm9, %v934_v58, %v930_v59  ;;  %v950_v8 = vsel %vm949_vm12, %v1355_v31, %v946_v61 }
 0x513   :  { %v958_v63 = vmul.f32 %v957_v2, %v935_v28  ;;  %v955_v12 = vsel %vm952_vm13, %v954_v60, %v950_v8 }
 0x514   :  { %v961_v13 = vsub.f32 1.0, %v955_v12  ;;  %v963_v20 = vmul.f32 %v955_v12, %v1848_v37 }
 0x515   :  { %v959_v6 = vadd.f32 %v958_v63, %v916_v4 }
 0x517   :  { %1356 = vtanh.f32 %v959_v6  ;;  %v1251_v6 = vsel %vm1250_vm7, 1.0, %v1504_v24 }
 0x51d   :  { %v1357_v15 = vpop.eup %1356 }
 0x51e   :  { %v962_v17 = vmul.f32 %v1357_v15, %v961_v13 }
 0x520   :  { %v964_v23 = vadd.f32 %v963_v20, %v962_v17 }
 0x522   :  { %v970_v27 = vsub.f32 %v964_v23, %v1848_v37  ;;  %v973_v56 = vmul.f32 %v1247_v21, %v964_v23 }
 0x524   :  { %v971_v45 = vmul.f32 %v1247_v21, %v970_v27  ;;  %v974_v29 = vpack.c.bf16 %v973_v56, %v973_v56 }
 0x526   :  { %v1865_v32 = vadd.f32 %v971_v45, %v1848_v37  ;;  %976 = vst [vmem:[#allocation9 + $0x18] sm:$0xf] %v974_v29 }
 0x528   :  { %v977_v33 = vpack.c.bf16 %v1865_v32, %v1865_v32 }
 0x52a   :  { %986 = vmatmul.bf16.vlgmr.msrb.gmra.mxu1 %v977_v33  ;;  %999 = vmatmul.bf16.vlgmr.msrb.gmra.mxu2 %v977_v33 }
 0x52b   :  { %1012 = vmatmul.bf16.vlgmr.msrb.gmra.mxu3 %v977_v33 }
 0x5a7   :  { %v987_v38 = vpop.f32.mrf.mxu1 }
 0x5a8   :  { %v1023_v40 = vadd.f32 %v1020_v36, %v987_v38 }
 0x5aa   :  { %v1248_v42 = vmul.f32 -1.442695, %v1023_v40 }
 0x5ac   :  { %1358 = vpow2.f32 %v1248_v42 }
 0x5ad   :  { %v1000_v16 = vpop.f32.mrf.mxu2 }
 0x5ae   :  { %v1043_v46 = vadd.f32 %v1021_v43, %v1000_v16  ;;  %v1013_v47 = vpop.f32.mrf.mxu3 }
 0x5af   :  { %v989_v50 = vpop.f32.mrf.mxu1  ;;  %v1063_v5 = vadd.f32 %v1855_v25, %v1013_v47 }
 0x5b0   :  { %v1249_v37 = vmul.f32 -1.442695, %v1043_v46 }
 0x5b2   :  { %v1359_v51 = vpop.eup %1358  ;;  %1360 = vpow2.f32 %v1249_v37 }
 0x5b3   :  { %v1027_v52 = vadd.f32 1.0, %v1359_v51 }
 0x5b5   :  { %1362 = vrcp.f32 %v1027_v52  ;;  %v1002_v55 = vpop.f32.mrf.mxu2  ;;  %v1039_v22 = vand.u32 2147483648, %v1027_v52  ;;  %v1037_v26 = vand.u32 2147483647, %v1027_v52  ;;  %vm1033_vm0 = vweird.f32 %v1027_v52 }
 0x5b6   :  { %v1015_v7 = vpop.f32.mrf.mxu3 }
 0x5b7   :  { %v1040_v53 = vor.u32 1.1754944e-38, %v1039_v22  ;;  %vm1038_vm2 = vcmp.eq.f32.partialorder %v1037_v26, 8.507059e+37 }
 0x5b8   :  { %v1361_v54 = vpop.eup %1360 }
 0x5b9   :  { %v1047_v10 = vadd.f32 1.0, %v1361_v54 }
 0x5bb   :  { %v1363_v11 = vpop.eup %1362  ;;  %1364 = vrcp.f32 %v1047_v10  ;;  %v1059_v49 = vand.u32 2147483648, %v1047_v10  ;;  %v1057_v58 = vand.u32 2147483647, %v1047_v10  ;;  %vm1053_vm4 = vweird.f32 %v1047_v10 }
 0x5bc   :  { %v1029_v3 = vmul.f32 %v1363_v11, %v1027_v52  ;;  %vm1034_vm15 = vweird.f32 %v1363_v11 }
 0x5bd   :  { %vm1035_vm1 = vmor %vm1033_vm0, %vm1034_vm15  ;;  %v1060_v59 = vor.u32 1.1754944e-38, %v1059_v49  ;;  %vm1058_vm6 = vcmp.eq.f32.partialorder %v1057_v58, 8.507059e+37 }
 0x5be   :  { %v1030_v19 = vsub.f32 1.0, %v1029_v3 }
 0x5c0   :  { %v1031_v30 = vmul.f32 %v1363_v11, %v1030_v19 }
 0x5c1   :  { %v1365_v35 = vpop.eup %1364 }
 0x5c2   :  { %v1049_v31 = vmul.f32 %v1365_v35, %v1047_v10  ;;  %v1032_v44 = vadd.f32 %v1363_v11, %v1031_v30  ;;  %vm1054_vm3 = vweird.f32 %v1365_v35 }
 0x5c3   :  { %vm1055_vm5 = vmor %vm1053_vm4, %vm1054_vm3 }
 0x5c4   :  { %v1050_v62 = vsub.f32 1.0, %v1049_v31  ;;  %v1036_v41 = vsel %vm1035_vm1, %v1363_v11, %v1032_v44 }
 0x5c5   :  { %v1041_v9 = vsel %vm1038_vm2, %v1040_v53, %v1036_v41 }
 0x5c6   :  { %v1051_v48 = vmul.f32 %v1365_v35, %v1050_v62  ;;  %v1064_v57 = vmul.f32 %v1063_v5, %v1041_v9 }
 0x5c8   :  { %v1052_v2 = vadd.f32 %v1365_v35, %v1051_v48  ;;  %v1065_v4 = vadd.f32 %v1064_v57, %v1022_v39 }
 0x5ca   :  { %v1056_v28 = vsel %vm1055_vm5, %v1365_v35, %v1052_v2  ;;  %1366 = vtanh.f32 %v1065_v4 }
 0x5cb   :  { %v1061_v61 = vsel %vm1058_vm6, %v1060_v59, %v1056_v28 }
 0x5cc   :  { %v1067_v63 = vsub.f32 1.0, %v1061_v61  ;;  %v1069_v1 = vmul.f32 %v1061_v61, %v1865_v32 }
 0x5d0   :  { %v1367_v0 = vpop.eup %1366 }
 0x5d1   :  { %v1068_v25 = vmul.f32 %v1367_v0, %v1067_v63 }
 0x5d3   :  { %v1070_v8 = vadd.f32 %v1069_v1, %v1068_v25 }
 0x5d5   :  { %v1079_v60 = vmul.f32 %v1251_v6, %v1070_v8  ;;  %v1076_v12 = vsub.f32 %v1070_v8, %v1865_v32 }
 0x5d7   :  { %v1080_v13 = vpack.c.bf16 %v1079_v60, %v1079_v60  ;;  %v1077_v24 = vmul.f32 %v1251_v6, %v1076_v12 }
 0x5d9   :  { %1082 = vst [vmem:[#allocation9 + $0x1c] sm:$0xf] %v1080_v13  ;;  %v1078_v14 = vadd.f32 %v1077_v24, %v1865_v32 }
 0x5da   :  { %1100 = dma.vmem_to_hbm [thread:$0]  %s1093_s11, 512, %s1095_s14, [#allocation5], %s1507_s4, %s1507_s4, %s1508_s20  }
 0x5db   :  { %1087 = vst [vmem:[#allocation10] sm:$0xff] %v1078_v14 }
 0x5dc   :  { %1111 = dma.vmem_to_hbm [thread:$0]  %s1107_s16, 128, %s1109_s19, [#allocation11]  }
 0x5dd   :  { %1494 = dma.done.wait [#allocation5], 512  }
 0x5de   :  { %1495 = vsyncadd [#allocation5], 4294966784 }
 0x5df   :  { %1496 = dma.done.wait [#allocation11], 128  }
 0x5e0   :  { %1497 = vsyncadd [#allocation11], 4294967168 }
 0x5e1   :  { %1120 = vsyncpa [#allocation4], 1 }
 0x5e2   :  { %1121 = vsyncpa [#allocation7], 1 }
 0x5e3   :  { %1122 = vsyncpa [#allocation5], 1 }
 0x5e4   :  { %1123 = vsyncpa [#allocation11], 1 }

</bundles_post_ra>
